<compile_context>
chip_gen: v5e
topology: v5e:2x2
jax: 0.10.0
libtpu: 0.0.40
codegen_flags: <defaults>
</compile_context>

<pallas_src>
import functools

import jax
import jax.numpy as jnp
import numpy as np
from jax.experimental import pallas as pl
from jax.experimental.pallas import tpu as pltpu


def _round_up(a, b):
    return (a + b - 1) // b * b


def _pinn_kernel(x_ref, p_ref, o_ref, *, dims, lane_chunk):
    """Whole-MLP forward for one batch tile (batch on the lane axis).

    x_ref : (tn, in_pad)            batch-major input tile (as stored in HBM)
    p_ref : (L, max_out, max_in+1)  packed param slab; bias in the last column;
                                    fc_out weight packed TRANSPOSED when out_ch==1
    o_ref : (out_ch, tn)            lane-dense output tile
    dims  : (in_ch, *chs, out_ch)   logical layer widths (static).
    """
    L = len(dims) - 1
    in_ch, out_ch = dims[0], dims[-1]
    max_in = p_ref.shape[2] - 1
    tn = x_ref.shape[0]

    # Hoist the tiny, VMEM-resident weight / bias loads out of the chunk loop.
    ws, bs = [], []
    for i in range(L):
        out_f, in_f = dims[i + 1], dims[i]
        if i == L - 1 and out_ch == 1:
            # fc_out weight stored transposed -> (in_f, 1): feeds the
            # multiply + sublane-reduce path with no in-kernel transpose.
            ws.append(p_ref[i, :in_f, :out_f].astype(jnp.float32))
        else:
            ws.append(p_ref[i, :out_f, :in_f].astype(jnp.float32))
        bs.append(p_ref[i, :out_f, max_in:max_in + 1].astype(jnp.float32))

    # Lane-chunked so live activations stay ~<=32 vregs even on v5e.
    for c0 in range(0, tn, lane_chunk):
        cw = min(lane_chunk, tn - c0)
        # (cw, in_pad) -> (in_pad, cw): tiny XLU transpose, batch moves to lanes.
        xt = x_ref[c0:c0 + cw, :].astype(jnp.float32).T

        # --- fc_in: K == in_ch is tiny -> skip the MXU, use VPU FMAs. ---
        if in_ch <= 8:
            h = bs[0]
            for k in range(in_ch):
                h = h + ws[0][:, k:k + 1] * xt[k:k + 1, :]
        else:
            h = jnp.dot(ws[0], xt[:in_ch, :],
                        preferred_element_type=jnp.float32) + bs[0]
        # NOTE: matching the nn.Module, there is NO tanh after fc_in.

        # --- hidden ffns: square matmuls on the MXU, tanh on the EUP. ---
        for i in range(1, L - 1):
            h = jnp.tanh(jnp.dot(ws[i], h,
                                 preferred_element_type=jnp.float32) + bs[i])

        # --- fc_out: M == out_ch == 1 -> multiply + sublane reduce (XLU/VPU). ---
        if out_ch == 1:
            y = jnp.sum(ws[L - 1] * h, axis=0, keepdims=True) + bs[L - 1]
        else:
            y = jnp.dot(ws[L - 1], h,
                        preferred_element_type=jnp.float32) + bs[L - 1]

        o_ref[:, c0:c0 + cw] = y.astype(o_ref.dtype)      # lane-dense store


def pack_pinn_params(params):
    """Pack all layer weights & biases into one zero-padded f32 slab.

    slab[i, :out_f, :in_f] = W_i and slab[i, :out_f, -1] = b_i, except the last
    layer's weight, which is stored transposed (slab[L-1, :in_f, :1] = W.T) when
    out_ch == 1 so the kernel's reduce path needs no transpose.
    """
    dims = [params[0][0].shape[1]] + [w.shape[0] for w, _ in params]
    L = len(params)
    max_in = max(dims[:-1])
    max_out = max(max(dims[1:]), dims[-2])
    slab = jnp.zeros((L, max_out, max_in + 1), jnp.float32)
    for i, (w, b) in enumerate(params):
        w = w.astype(jnp.float32)
        if i == L - 1 and dims[-1] == 1:
            slab = slab.at[i, :w.shape[1], :w.shape[0]].set(w.T)
        else:
            slab = slab.at[i, :w.shape[0], :w.shape[1]].set(w)
        slab = slab.at[i, :w.shape[0], max_in].set(b.astype(jnp.float32))
    return slab, tuple(dims)


def pinn_forward(x, params, *, lane_chunk=512, max_tile=8192):
    """x: (N, in_ch). params: list of (W, b), W in PyTorch nn.Linear layout
    (out_f, in_f), b shape (out_f,). Returns (N, out_ch)."""
    n, in_ch = x.shape
    slab, dims = pack_pinn_params(params)
    out_ch = dims[-1]
    L = len(dims) - 1

    # ---- Tile selection: single grid step unless the batch is large. --------
    n128 = _round_up(n, 128)
    n_steps = -(-n128 // max_tile)
    tn = _round_up(-(-n128 // n_steps), 128)
    n_pad = tn * n_steps
    lane_chunk = max(128, min(_round_up(lane_chunk, 128), tn))

    # Minimal wrapper-side padding only (no transpose): batch up to the tile,
    # feature dim up to 8 so the in-kernel transpose has a friendly shape.
    in_pad = max(8, _round_up(in_ch, 8))
    if (n_pad, in_pad) != (n, in_ch):
        x_in = jnp.pad(x, ((0, n_pad - n), (0, in_pad - in_ch)))
    else:
        x_in = x

    flops = 2 * n_pad * sum(dims[i] * dims[i + 1] for i in range(L))
    transcendentals = n_pad * sum(dims[i + 1] for i in range(1, L - 1))
    bytes_accessed = 4 * (n_pad * (in_pad + out_ch) + int(slab.size))

    kernel = functools.partial(_pinn_kernel, dims=dims, lane_chunk=lane_chunk)

    out_t = pl.pallas_call(
        kernel,
        out_shape=jax.ShapeDtypeStruct((out_ch, n_pad), x.dtype),
        grid=(n_pad // tn,),
        in_specs=[
            pl.BlockSpec((tn, in_pad), lambda i: (i, 0)),
            # Single constant-index param slab: one DMA, resident across steps
            # (and with grid=1 -- the common small-batch case -- loaded once).
            pl.BlockSpec(slab.shape, lambda i: (0, 0, 0)),
        ],
        out_specs=pl.BlockSpec((out_ch, tn), lambda i: (0, i)),
        compiler_params=pltpu.CompilerParams(
            dimension_semantics=("parallel",)),
        cost_estimate=pl.CostEstimate(flops=flops,
                                      transcendentals=transcendentals,
                                      bytes_accessed=bytes_accessed),
    )(x_in, slab)

    # Tiny (out_ch, n_pad) -> (N, out_ch) slice+transpose kept out of the kernel
    # so in-kernel stores stay lane-dense.
    return out_t[:, :n].T


def init_pinn_params(key, in_ch, chs, out_ch):
    """Xavier-normal weights (matches nn.init.xavier_normal_), zero biases.
    Weights stored in PyTorch nn.Linear layout: (out_f, in_f)."""
    dims = [in_ch] + list(chs) + [out_ch]
    params = []
    for i in range(len(dims) - 1):
        key, sub = jax.random.split(key)
        fan_in, fan_out = dims[i], dims[i + 1]
        std = float(np.sqrt(2.0 / (fan_in + fan_out)))
        w = std * jax.random.normal(sub, (fan_out, fan_in), dtype=jnp.float32)
        b = jnp.zeros((fan_out,), dtype=jnp.float32)
        params.append((w, b))
    return params


def pinn_forward_ref(x, params):
    """Pure-JAX reference mirroring the PyTorch forward:
    fc_in (no act) -> [Linear, tanh] per ffn -> fc_out."""
    w, b = params[0]
    h = x @ w.T + b
    for w, b in params[1:-1]:
        h = jnp.tanh(h @ w.T + b)
    w, b = params[-1]
    return h @ w.T + b


if __name__ == "__main__":
    key = jax.random.PRNGKey(0)
    in_ch, chs, out_ch = 2, [32, 32, 32], 1     # Burgers PINN: inputs (x, t) -> u
    batch = 1000                                # not tile-aligned -> exercises padding

    kp, kx = jax.random.split(key)
    params = init_pinn_params(kp, in_ch, chs, out_ch)
    x = jax.random.normal(kx, (batch, in_ch), dtype=jnp.float32)

    fwd = jax.jit(pinn_forward)
    out = jax.block_until_ready(fwd(x, params))

    ref = pinn_forward_ref(x, params)
    np.testing.assert_allclose(np.asarray(out), np.asarray(ref), rtol=5e-5, atol=5e-5)

    print("KERNEL_OK")
</pallas_src>

<mosaic_0001>
module attributes {stable_mosaic.version = 11 : i64} {
  func.func @_pinn_kernel(%arg0: i32, %arg1: memref<1024x8xf32, #tpu.memory_space<vmem>>, %arg2: memref<4x32x33xf32, #tpu.memory_space<vmem>>, %arg3: memref<1x1024xf32, #tpu.memory_space<vmem>>) attributes {dimension_semantics = [#tpu.dimension_semantics<parallel>], iteration_bounds = array<i64: 1>, scalar_prefetch = 0 : i64, scratch_operands = 0 : i64, tpu.core_type = #tpu.core_type<tc>, window_params = [{transform_indices = @transform_0, window_bounds = array<i64: 1024, 8>}, {pipeline_mode = #tpu.pipeline_mode<synchronous>, transform_indices = @transform_1, window_bounds = array<i64: 4, 32, 33>}, {transform_indices = @transform_2, window_bounds = array<i64: 1, 1024>}]} {
    %c0 = arith.constant 0 : index
    %c0_0 = arith.constant 0 : index
    %c0_1 = arith.constant 0 : index
    %0 = vector.load %arg2[%c0, %c0_0, %c0_1] : memref<4x32x33xf32, #tpu.memory_space<vmem>>, vector<1x32x2xf32>
    %1 = vector.shape_cast %0 : vector<1x32x2xf32> to vector<32x2xf32>
    %c0_2 = arith.constant 0 : index
    %c0_3 = arith.constant 0 : index
    %c32 = arith.constant 32 : index
    %2 = vector.load %arg2[%c0_2, %c0_3, %c32] : memref<4x32x33xf32, #tpu.memory_space<vmem>>, vector<1x32x1xf32>
    %3 = vector.shape_cast %2 : vector<1x32x1xf32> to vector<32x1xf32>
    %c1 = arith.constant 1 : index
    %c0_4 = arith.constant 0 : index
    %c0_5 = arith.constant 0 : index
    %4 = vector.load %arg2[%c1, %c0_4, %c0_5] : memref<4x32x33xf32, #tpu.memory_space<vmem>>, vector<1x32x32xf32>
    %5 = vector.shape_cast %4 : vector<1x32x32xf32> to vector<32x32xf32>
    %c1_6 = arith.constant 1 : index
    %c0_7 = arith.constant 0 : index
    %c32_8 = arith.constant 32 : index
    %6 = vector.load %arg2[%c1_6, %c0_7, %c32_8] : memref<4x32x33xf32, #tpu.memory_space<vmem>>, vector<1x32x1xf32>
    %7 = vector.shape_cast %6 : vector<1x32x1xf32> to vector<32x1xf32>
    %c2 = arith.constant 2 : index
    %c0_9 = arith.constant 0 : index
    %c0_10 = arith.constant 0 : index
    %8 = vector.load %arg2[%c2, %c0_9, %c0_10] : memref<4x32x33xf32, #tpu.memory_space<vmem>>, vector<1x32x32xf32>
    %9 = vector.shape_cast %8 : vector<1x32x32xf32> to vector<32x32xf32>
    %c2_11 = arith.constant 2 : index
    %c0_12 = arith.constant 0 : index
    %c32_13 = arith.constant 32 : index
    %10 = vector.load %arg2[%c2_11, %c0_12, %c32_13] : memref<4x32x33xf32, #tpu.memory_space<vmem>>, vector<1x32x1xf32>
    %11 = vector.shape_cast %10 : vector<1x32x1xf32> to vector<32x1xf32>
    %c3 = arith.constant 3 : index
    %c0_14 = arith.constant 0 : index
    %c0_15 = arith.constant 0 : index
    %12 = vector.load %arg2[%c3, %c0_14, %c0_15] : memref<4x32x33xf32, #tpu.memory_space<vmem>>, vector<1x32x1xf32>
    %13 = vector.shape_cast %12 : vector<1x32x1xf32> to vector<32x1xf32>
    %c3_16 = arith.constant 3 : index
    %c0_17 = arith.constant 0 : index
    %c32_18 = arith.constant 32 : index
    %14 = vector.load %arg2[%c3_16, %c0_17, %c32_18] : memref<4x32x33xf32, #tpu.memory_space<vmem>>, vector<1x1x1xf32>
    %15 = vector.shape_cast %14 : vector<1x1x1xf32> to vector<1x1xf32>
    %c0_19 = arith.constant 0 : index
    %c0_20 = arith.constant 0 : index
    %16 = vector.load %arg1[%c0_19, %c0_20] : memref<1024x8xf32, #tpu.memory_space<vmem>>, vector<512x8xf32>
    %17 = tpu.transpose %16, [1, 0] : vector<512x8xf32> -> vector<8x512xf32>
    %18 = vector.extract_strided_slice %1 {offsets = [0, 0], sizes = [32, 1], strides = [1, 1]} : vector<32x2xf32> to vector<32x1xf32>
    %19 = vector.extract_strided_slice %17 {offsets = [0, 0], sizes = [1, 512], strides = [1, 1]} : vector<8x512xf32> to vector<1x512xf32>
    %20 = vector.broadcast %18 : vector<32x1xf32> to vector<32x512xf32>
    %21 = vector.broadcast %19 : vector<1x512xf32> to vector<32x512xf32>
    %22 = arith.mulf %20, %21 : vector<32x512xf32>
    %23 = vector.broadcast %3 : vector<32x1xf32> to vector<32x512xf32>
    %24 = arith.addf %23, %22 : vector<32x512xf32>
    %25 = vector.extract_strided_slice %1 {offsets = [0, 1], sizes = [32, 1], strides = [1, 1]} : vector<32x2xf32> to vector<32x1xf32>
    %26 = vector.extract_strided_slice %17 {offsets = [1, 0], sizes = [1, 512], strides = [1, 1]} : vector<8x512xf32> to vector<1x512xf32>
    %27 = vector.broadcast %25 : vector<32x1xf32> to vector<32x512xf32>
    %28 = vector.broadcast %26 : vector<1x512xf32> to vector<32x512xf32>
    %29 = arith.mulf %27, %28 : vector<32x512xf32>
    %30 = arith.addf %24, %29 : vector<32x512xf32>
    %cst = arith.constant dense<0.000000e+00> : vector<32x512xf32>
    %31 = tpu.matmul %5, %30, %cst {dimension_numbers = #tpu.dot_dimension_numbers<[1], [0], [0], [1], [0, 0, 1, 1], [], []>} : vector<32x32xf32>, vector<32x512xf32>, vector<32x512xf32> -> vector<32x512xf32>
    %32 = vector.broadcast %7 : vector<32x1xf32> to vector<32x512xf32>
    %33 = arith.addf %31, %32 : vector<32x512xf32>
    %34 = math.tanh %33 : vector<32x512xf32>
    %cst_21 = arith.constant dense<0.000000e+00> : vector<32x512xf32>
    %35 = tpu.matmul %9, %34, %cst_21 {dimension_numbers = #tpu.dot_dimension_numbers<[1], [0], [0], [1], [0, 0, 1, 1], [], []>} : vector<32x32xf32>, vector<32x512xf32>, vector<32x512xf32> -> vector<32x512xf32>
    %36 = vector.broadcast %11 : vector<32x1xf32> to vector<32x512xf32>
    %37 = arith.addf %35, %36 : vector<32x512xf32>
    %38 = math.tanh %37 : vector<32x512xf32>
    %39 = vector.broadcast %13 : vector<32x1xf32> to vector<32x512xf32>
    %40 = arith.mulf %39, %38 : vector<32x512xf32>
    %cst_22 = arith.constant dense<0.000000e+00> : vector<512xf32>
    %41 = vector.multi_reduction <add>, %40, %cst_22 [0] : vector<32x512xf32> to vector<512xf32>
    %42 = vector.shape_cast %41 : vector<512xf32> to vector<1x512xf32>
    %43 = vector.broadcast %15 : vector<1x1xf32> to vector<1x512xf32>
    %44 = arith.addf %42, %43 : vector<1x512xf32>
    %c0_23 = arith.constant 0 : index
    %c0_24 = arith.constant 0 : index
    %45 = vector.load %arg3[%c0_23, %c0_24] : memref<1x1024xf32, #tpu.memory_space<vmem>>, vector<1x512xf32>
    tpu.vector_store %arg3[%c0_23, %c0_24], %44 {strides = array<i32>} : memref<1x1024xf32, #tpu.memory_space<vmem>>, vector<1x512xf32>,
    %c512 = arith.constant 512 : index
    %c0_25 = arith.constant 0 : index
    %46 = vector.load %arg1[%c512, %c0_25] : memref<1024x8xf32, #tpu.memory_space<vmem>>, vector<512x8xf32>
    %47 = tpu.transpose %46, [1, 0] : vector<512x8xf32> -> vector<8x512xf32>
    %48 = vector.extract_strided_slice %1 {offsets = [0, 0], sizes = [32, 1], strides = [1, 1]} : vector<32x2xf32> to vector<32x1xf32>
    %49 = vector.extract_strided_slice %47 {offsets = [0, 0], sizes = [1, 512], strides = [1, 1]} : vector<8x512xf32> to vector<1x512xf32>
    %50 = vector.broadcast %48 : vector<32x1xf32> to vector<32x512xf32>
    %51 = vector.broadcast %49 : vector<1x512xf32> to vector<32x512xf32>
    %52 = arith.mulf %50, %51 : vector<32x512xf32>
    %53 = vector.broadcast %3 : vector<32x1xf32> to vector<32x512xf32>
    %54 = arith.addf %53, %52 : vector<32x512xf32>
    %55 = vector.extract_strided_slice %1 {offsets = [0, 1], sizes = [32, 1], strides = [1, 1]} : vector<32x2xf32> to vector<32x1xf32>
    %56 = vector.extract_strided_slice %47 {offsets = [1, 0], sizes = [1, 512], strides = [1, 1]} : vector<8x512xf32> to vector<1x512xf32>
    %57 = vector.broadcast %55 : vector<32x1xf32> to vector<32x512xf32>
    %58 = vector.broadcast %56 : vector<1x512xf32> to vector<32x512xf32>
    %59 = arith.mulf %57, %58 : vector<32x512xf32>
    %60 = arith.addf %54, %59 : vector<32x512xf32>
    %cst_26 = arith.constant dense<0.000000e+00> : vector<32x512xf32>
    %61 = tpu.matmul %5, %60, %cst_26 {dimension_numbers = #tpu.dot_dimension_numbers<[1], [0], [0], [1], [0, 0, 1, 1], [], []>} : vector<32x32xf32>, vector<32x512xf32>, vector<32x512xf32> -> vector<32x512xf32>
    %62 = vector.broadcast %7 : vector<32x1xf32> to vector<32x512xf32>
    %63 = arith.addf %61, %62 : vector<32x512xf32>
    %64 = math.tanh %63 : vector<32x512xf32>
    %cst_27 = arith.constant dense<0.000000e+00> : vector<32x512xf32>
    %65 = tpu.matmul %9, %64, %cst_27 {dimension_numbers = #tpu.dot_dimension_numbers<[1], [0], [0], [1], [0, 0, 1, 1], [], []>} : vector<32x32xf32>, vector<32x512xf32>, vector<32x512xf32> -> vector<32x512xf32>
    %66 = vector.broadcast %11 : vector<32x1xf32> to vector<32x512xf32>
    %67 = arith.addf %65, %66 : vector<32x512xf32>
    %68 = math.tanh %67 : vector<32x512xf32>
    %69 = vector.broadcast %13 : vector<32x1xf32> to vector<32x512xf32>
    %70 = arith.mulf %69, %68 : vector<32x512xf32>
    %cst_28 = arith.constant dense<0.000000e+00> : vector<512xf32>
    %71 = vector.multi_reduction <add>, %70, %cst_28 [0] : vector<32x512xf32> to vector<512xf32>
    %72 = vector.shape_cast %71 : vector<512xf32> to vector<1x512xf32>
    %73 = vector.broadcast %15 : vector<1x1xf32> to vector<1x512xf32>
    %74 = arith.addf %72, %73 : vector<1x512xf32>
    %c0_29 = arith.constant 0 : index
    %c512_30 = arith.constant 512 : index
    %75 = vector.load %arg3[%c0_29, %c512_30] : memref<1x1024xf32, #tpu.memory_space<vmem>>, vector<1x512xf32>
    tpu.vector_store %arg3[%c0_29, %c512_30], %74 {strides = array<i32>} : memref<1x1024xf32, #tpu.memory_space<vmem>>, vector<1x512xf32>,
    return
  }
  func.func @transform_0(%arg0: i32) -> (i32, i32) {
    %c0_i32 = arith.constant 0 : i32
    %c0_i32_0 = arith.constant 0 : i32
    return %arg0, %c0_i32 : i32, i32
  }
  func.func @transform_1(%arg0: i32) -> (i32, i32, i32) {
    %c0_i32 = arith.constant 0 : i32
    %c0_i32_0 = arith.constant 0 : i32
    %c0_i32_1 = arith.constant 0 : i32
    %c0_i32_2 = arith.constant 0 : i32
    return %c0_i32, %c0_i32_0, %c0_i32_1 : i32, i32, i32
  }
  func.func @transform_2(%arg0: i32) -> (i32, i32) {
    %c0_i32 = arith.constant 0 : i32
    %c0_i32_0 = arith.constant 0 : i32
    return %c0_i32, %arg0 : i32, i32
  }
}

</mosaic_0001>

<bundles_post_ra>
// kernel: pinn_forward.1
= control target key start
LH: loop header
LB: loop body
LE: loop exit
PB: predicated region body
PF: predicated region fallthrough
CT: control target
= control target key end

     0   :  { %v1590_v0 = vmov 32   ;;  %v1591_v1 = vmov 0   ;;  %v1592_v5 = vmov 1   ;;  %vm367_vm0 = vcmask 261120   ;;  %s2524_s1 = inlined_call_operand.vmem [shape: f32[4,32,33], index: 1, kind: input, shape index: {}]   ;;  %s2525_s0 = inlined_call_operand.vmem [shape: f32[1024,8], index: 0, kind: input, shape index: {}]   ;;  %s2526_s2 = inlined_call_operand.vmem [shape: f32[1,1024], index: 2, kind: output, shape index: {}]  }
   0x1   :  { %1449 = vset.pattern.permute.xlu1 %v1590_v0  ;;  %1451 = vset.pattern.permute.xlu2 %v1591_v1  ;;  %v14_v2 = vld [vmem:[%s2524_s1 + $0x18] sm:$0xff]  ;;  %v12_v3 = vld [vmem:[%s2524_s1 + $0x8] sm:$0xff]  ;;  %v13_v4 = vld [vmem:[%s2524_s1 + $0x10] sm:$0xff]  ;;  %vm756_vm1 = vcmask 1040384   ;;  %vm758_vm2 = vcmask 1042434   ;;  %vm760_vm3 = vcmask 1041408  }
   0x2   :  { %1448 = vset.pattern.permute.xlu0 %v1591_v1  ;;  %276 = vperm.xlu1 %1449, %v14_v2   ;;  %v11_v6 = vld [vmem:[%s2524_s1] sm:$0xff]  ;;  %v48_v9 = vld [vmem:[%s2525_s0 + $0x88] sm:$0xff]  ;;  %v49_v11 = vld [vmem:[%s2525_s0 + $0x90] sm:$0xff] }
   0x3   :  { %240 = vperm.xlu0 %1448, %v14_v2   ;;  %230 = vperm.xlu2 %1451, %v12_v3   ;;  %v47_v7 = vld [vmem:[%s2525_s0 + $0x80] sm:$0xff]  ;;  %v80_v10 = vld [vmem:[%s2525_s0 + $0x188] sm:$0xff]  ;;  %v81_v12 = vld [vmem:[%s2525_s0 + $0x190] sm:$0xff] }
   0x4   :  { %v79_v8 = vld [vmem:[%s2525_s0 + $0x180] sm:$0xff]  ;;  %v50_v14 = vld [vmem:[%s2525_s0 + $0x98] sm:$0xff]  ;;  %v64_v16 = vld [vmem:[%s2525_s0 + $0x108] sm:$0xff] }
   0x5   :  { %v63_v13 = vld [vmem:[%s2525_s0 + $0x100] sm:$0xff]  ;;  %v82_v15 = vld [vmem:[%s2525_s0 + $0x198] sm:$0xff]  ;;  %v65_v19 = vld [vmem:[%s2525_s0 + $0x110] sm:$0xff] }
   0x6   :  { %v51_v17 = vld [vmem:[%s2525_s0 + $0xa0] sm:$0xff]  ;;  %v52_v20 = vld [vmem:[%s2525_s0 + $0xa8] sm:$0xff]  ;;  %v66_v22 = vld [vmem:[%s2525_s0 + $0x118] sm:$0xff] }
   0x7   :  { %v83_v18 = vld [vmem:[%s2525_s0 + $0x1a0] sm:$0xff]  ;;  %v84_v21 = vld [vmem:[%s2525_s0 + $0x1a8] sm:$0xff]  ;;  %v53_v23 = vld [vmem:[%s2525_s0 + $0xb0] sm:$0xff] }
   0x8   :  { %v85_v24 = vld [vmem:[%s2525_s0 + $0x1b0] sm:$0xff]  ;;  %v67_v25 = vld [vmem:[%s2525_s0 + $0x120] sm:$0xff]  ;;  %v54_v26 = vld [vmem:[%s2525_s0 + $0xb8] sm:$0xff] }
   0x9   :  { %v86_v27 = vld [vmem:[%s2525_s0 + $0x1b8] sm:$0xff]  ;;  %v68_v28 = vld [vmem:[%s2525_s0 + $0x128] sm:$0xff]  ;;  %v55_v29 = vld [vmem:[%s2525_s0 + $0xc0] sm:$0xff] }
   0xa   :  { %1450 = vset.pattern.permute.xlu1 %v1592_v5  ;;  %v87_v30 = vld [vmem:[%s2525_s0 + $0x1c0] sm:$0xff]  ;;  %v69_v31 = vld [vmem:[%s2525_s0 + $0x130] sm:$0xff]  ;;  %v56_v32 = vld [vmem:[%s2525_s0 + $0xc8] sm:$0xff] }
   0xb   :  { %235 = vperm.xlu0 %1448, %v13_v4   ;;  %1452 = vset.pattern.permute.xlu2 %v1590_v0  ;;  %v88_v33 = vld [vmem:[%s2525_s0 + $0x1c8] sm:$0xff]  ;;  %v70_v34 = vld [vmem:[%s2525_s0 + $0x138] sm:$0xff]  ;;  %v57_v35 = vld [vmem:[%s2525_s0 + $0xd0] sm:$0xff] }
   0xc   :  { %308 = vperm.xlu1 %1450, %v14_v2   ;;  %272 = vperm.xlu2 %1452, %v13_v4   ;;  %v89_v36 = vld [vmem:[%s2525_s0 + $0x1d0] sm:$0xff]  ;;  %v71_v37 = vld [vmem:[%s2525_s0 + $0x140] sm:$0xff]  ;;  %v58_v38 = vld [vmem:[%s2525_s0 + $0xd8] sm:$0xff] }
   0xd   :  { %v90_v39 = vld [vmem:[%s2525_s0 + $0x1d8] sm:$0xff]  ;;  %v72_v40 = vld [vmem:[%s2525_s0 + $0x148] sm:$0xff]  ;;  %v59_v41 = vld [vmem:[%s2525_s0 + $0xe0] sm:$0xff] }
   0xe   :  { %v91_v42 = vld [vmem:[%s2525_s0 + $0x1e0] sm:$0xff]  ;;  %v73_v43 = vld [vmem:[%s2525_s0 + $0x150] sm:$0xff]  ;;  %v60_v44 = vld [vmem:[%s2525_s0 + $0xe8] sm:$0xff] }
   0xf   :  { %v92_v45 = vld [vmem:[%s2525_s0 + $0x1e8] sm:$0xff]  ;;  %v74_v46 = vld [vmem:[%s2525_s0 + $0x158] sm:$0xff]  ;;  %v61_v47 = vld [vmem:[%s2525_s0 + $0xf0] sm:$0xff] }
  0x10   :  { %v93_v48 = vld [vmem:[%s2525_s0 + $0x1f0] sm:$0xff]  ;;  %v75_v49 = vld [vmem:[%s2525_s0 + $0x160] sm:$0xff]  ;;  %v62_v50 = vld [vmem:[%s2525_s0 + $0xf8] sm:$0xff] }
  0x11   :  { %v94_v52 = vld [vmem:[%s2525_s0 + $0x1f8] sm:$0xff]  ;;  %v76_v53 = vld [vmem:[%s2525_s0 + $0x168] sm:$0xff]  ;;  %v31_v56 = vld [vmem:[%s2525_s0] sm:$0xff] }
  0x12   :  { %v77_v57 = vld [vmem:[%s2525_s0 + $0x170] sm:$0xff]  ;;  %v32_v60 = vld [vmem:[%s2525_s0 + $0x8] sm:$0xff]  ;;  %v78_v61 = vld [vmem:[%s2525_s0 + $0x178] sm:$0xff] }
  0x13   :  { %1453 = vset.pattern.permute.xlu0 %v1592_v5 }
  0x14   :  { %1454 = vset.pattern.permute.xlu1 %v1591_v1  ;;  %304 = vperm.xlu0 %1453, %v13_v4  }
  0x15   :  { %268 = vperm.xlu2 %1452, %v12_v3   ;;  %225 = vperm.xlu1 %1454, %v11_v6  }
  0x1c   :  { %296 = vperm.xlu0 %1453, %v11_v6  }
  0x1d   :  { %264 = vperm.xlu2 %1452, %v11_v6   ;;  %1455 = vset.pattern.permute.xlu1 %v1592_v5  ;;  %v34_v6 = vld [vmem:[%s2525_s0 + $0x18] sm:$0xff] }
  0x1e   :  { %300 = vperm.xlu1 %1455, %v12_v3   ;;  %v33_v3 = vld [vmem:[%s2525_s0 + $0x10] sm:$0xff] }
  0x3e   :  { %127 = vxpose.xlu0.b32.start [1/16] (narrow) %v47_v7, 8 }
  0x43   :  { %191 = vxpose.xlu2.b32.start [1/16] (narrow) %v79_v8, 8 }
  0x46   :  { %128 = vxpose.xlu0.b32.cont [2/16] (narrow) %v48_v9, 8 }
  0x4b   :  { %192 = vxpose.xlu2.b32.cont [2/16] (narrow) %v80_v10, 8 }
  0x4e   :  { %129 = vxpose.xlu0.b32.cont [3/16] (narrow) %v49_v11, 8 }
  0x53   :  { %193 = vxpose.xlu2.b32.cont [3/16] (narrow) %v81_v12, 8  ;;  %159 = vxpose.xlu1.b32.start [1/16] (narrow) %v63_v13, 8  ;;  %v35_v13 = vld [vmem:[%s2525_s0 + $0x20] sm:$0xff] }
  0x56   :  { %130 = vxpose.xlu0.b32.cont [4/16] (narrow) %v50_v14, 8 }
  0x5b   :  { %194 = vxpose.xlu2.b32.cont [4/16] (narrow) %v82_v15, 8  ;;  %160 = vxpose.xlu1.b32.cont [2/16] (narrow) %v64_v16, 8 }
  0x5d   :  { %v1757_v51 = vpop.permute.xlu2 %230 }
  0x5e   :  { %131 = vxpose.xlu0.b32.cont [5/16] (narrow) %v51_v17, 8 }
  0x63   :  { %195 = vxpose.xlu2.b32.cont [5/16] (narrow) %v83_v18, 8  ;;  %161 = vxpose.xlu1.b32.cont [3/16] (narrow) %v65_v19, 8 }
  0x66   :  { %132 = vxpose.xlu0.b32.cont [6/16] (narrow) %v52_v20, 8  ;;  %v1767_v55 = vpop.permute.xlu2 %272 }
  0x6b   :  { %196 = vxpose.xlu2.b32.cont [6/16] (narrow) %v84_v21, 8  ;;  %162 = vxpose.xlu1.b32.cont [4/16] (narrow) %v66_v22, 8 }
  0x6e   :  { %133 = vxpose.xlu0.b32.cont [7/16] (narrow) %v53_v23, 8 }
  0x6f   :  { %v1785_v62 = vpop.permute.xlu2 %268 }
  0x73   :  { %197 = vxpose.xlu2.b32.cont [7/16] (narrow) %v85_v24, 8  ;;  %163 = vxpose.xlu1.b32.cont [5/16] (narrow) %v67_v25, 8 }
  0x74   :  { %v1777_v59 = vpop.permute.xlu1 %276 }
  0x75   :  { %v1765_v54 = vpop.permute.xlu0 %240 }
  0x76   :  { %134 = vxpose.xlu0.b32.cont [8/16] (narrow) %v54_v26, 8 }
  0x77   :  { %v1794_v4 = vpop.permute.xlu2 %264 }
  0x7b   :  { %198 = vxpose.xlu2.b32.cont [8/16] (narrow) %v86_v27, 8  ;;  %164 = vxpose.xlu1.b32.cont [6/16] (narrow) %v68_v28, 8 }
  0x7d   :  { %v1775_v58 = vpop.permute.xlu0 %235 }
  0x7e   :  { %135 = vxpose.xlu0.b32.cont [9/16] (narrow) %v55_v29, 8  ;;  %v1789_v2 = vpop.permute.xlu1 %308 }
  0x83   :  { %199 = vxpose.xlu2.b32.cont [9/16] (narrow) %v87_v30, 8  ;;  %165 = vxpose.xlu1.b32.cont [7/16] (narrow) %v69_v31, 8 }
  0x86   :  { %136 = vxpose.xlu0.b32.cont [10/16] (narrow) %v56_v32, 8  ;;  %v1787_v63 = vpop.permute.xlu0 %304 }
  0x87   :  { %v1801_v7 = vpop.permute.xlu1 %225 }
  0x8b   :  { %200 = vxpose.xlu2.b32.cont [10/16] (narrow) %v88_v33, 8  ;;  %166 = vxpose.xlu1.b32.cont [8/16] (narrow) %v70_v34, 8 }
  0x8e   :  { %137 = vxpose.xlu0.b32.cont [11/16] (narrow) %v57_v35, 8  ;;  %v1796_v5 = vpop.permute.xlu0 %296 }
  0x90   :  { %v1814_v21 = vpop.permute.xlu1 %300 }
  0x93   :  { %201 = vxpose.xlu2.b32.cont [11/16] (narrow) %v89_v36, 8  ;;  %167 = vxpose.xlu1.b32.cont [9/16] (narrow) %v71_v37, 8  ;;  %v36_v36 = vld [vmem:[%s2525_s0 + $0x28] sm:$0xff] }
  0x96   :  { %138 = vxpose.xlu0.b32.cont [12/16] (narrow) %v58_v38, 8 }
  0x9b   :  { %202 = vxpose.xlu2.b32.cont [12/16] (narrow) %v90_v39, 8  ;;  %168 = vxpose.xlu1.b32.cont [10/16] (narrow) %v72_v40, 8 }
  0x9e   :  { %139 = vxpose.xlu0.b32.cont [13/16] (narrow) %v59_v41, 8 }
  0xa3   :  { %203 = vxpose.xlu2.b32.cont [13/16] (narrow) %v91_v42, 8  ;;  %169 = vxpose.xlu1.b32.cont [11/16] (narrow) %v73_v43, 8 }
  0xa6   :  { %140 = vxpose.xlu0.b32.cont [14/16] (narrow) %v60_v44, 8 }
  0xab   :  { %204 = vxpose.xlu2.b32.cont [14/16] (narrow) %v92_v45, 8  ;;  %170 = vxpose.xlu1.b32.cont [12/16] (narrow) %v74_v46, 8 }
  0xae   :  { %141 = vxpose.xlu0.b32.cont [15/16] (narrow) %v61_v47, 8 }
  0xb3   :  { %205 = vxpose.xlu2.b32.cont [15/16] (narrow) %v93_v48, 8  ;;  %171 = vxpose.xlu1.b32.cont [13/16] (narrow) %v75_v49, 8  ;;  %v37_v49 = vld [vmem:[%s2525_s0 + $0x30] sm:$0xff] }
  0xb6   :  { %142 = vxpose.xlu0.b32.end [16/16] (narrow) %v62_v50, 8 }
  0xbb   :  { %206 = vxpose.xlu2.b32.end [16/16] (narrow) %v94_v52, 8  ;;  %172 = vxpose.xlu1.b32.cont [14/16] (narrow) %v76_v53, 8 }
  0xc3   :  { %95 = vxpose.xlu2.b32.start [1/16] (narrow) %v31_v56, 8  ;;  %173 = vxpose.xlu1.b32.cont [15/16] (narrow) %v77_v57, 8  ;;  %v38_v56 = vld [vmem:[%s2525_s0 + $0x38] sm:$0xff] }
  0xcb   :  { %96 = vxpose.xlu2.b32.cont [2/16] (narrow) %v32_v60, 8  ;;  %174 = vxpose.xlu1.b32.end [16/16] (narrow) %v78_v61, 8 }
  0xd3   :  { %97 = vxpose.xlu2.b32.cont [3/16] (narrow) %v33_v3, 8 }
  0xdb   :  { %98 = vxpose.xlu2.b32.cont [4/16] (narrow) %v34_v6, 8 }
  0xdc   :  { %v207_v8 = vpop.trf.xlu2 }
  0xdd   :  { %v246_v9 = vperm.slane %v207_v8, 0  ;;  %v314_v10 = vperm.slane %v207_v8, 1 }
  0xdf   :  { %v262_v11 = vmul.f32 %v246_v9, %v1765_v54  ;;  %v258_v12 = vmul.f32 %v246_v9, %v1775_v58  ;;  %v330_v14 = vmul.f32 %v314_v10, %v1789_v2  ;;  %v254_v15 = vmul.f32 %v246_v9, %v1757_v51 }
  0xe0   :  { %v326_v18 = vmul.f32 %v314_v10, %v1787_v63  ;;  %v250_v19 = vmul.f32 %v246_v9, %v1801_v7  ;;  %v322_v26 = vmul.f32 %v314_v10, %v1814_v21  ;;  %v318_v27 = vmul.f32 %v314_v10, %v1796_v5 }
  0xe1   :  { %v294_v16 = vadd.f32 %v1777_v59, %v262_v11  ;;  %v290_v17 = vadd.f32 %v1767_v55, %v258_v12  ;;  %v286_v25 = vadd.f32 %v1785_v62, %v254_v15 }
  0xe2   :  { %v143_v20 = vpop.trf.xlu0  ;;  %v282_v29 = vadd.f32 %v1794_v4, %v250_v19 }
  0xe3   :  { %v244_v22 = vperm.slane %v143_v20, 0  ;;  %v312_v23 = vperm.slane %v143_v20, 1  ;;  %99 = vxpose.xlu2.b32.cont [5/16] (narrow) %v35_v13, 8  ;;  %v346_v24 = vadd.f32 %v330_v14, %v294_v16  ;;  %v342_v28 = vadd.f32 %v326_v18, %v290_v17  ;;  %v39_v14 = vld [vmem:[%s2525_s0 + $0x40] sm:$0xff] }
  0xe4   :  { %v338_v33 = vadd.f32 %v322_v26, %v286_v25  ;;  %v334_v40 = vadd.f32 %v318_v27, %v282_v29  ;;  %v1859_v20 = vld [vmem:[%s2524_s1 + $0x20] sm:$0xff]  ;;  %v1887_v25 = vld [vmem:[%s2524_s1 + $0x30] sm:$0xff]  ;;  %v42_v26 = vld [vmem:[%s2525_s0 + $0x58] sm:$0xff] }
  0xe5   :  { %475 = vmatpush.msra.mxu3 %v346_v24  ;;  %v260_v30 = vmul.f32 %v244_v22, %v1765_v54  ;;  %v256_v31 = vmul.f32 %v244_v22, %v1775_v58  ;;  %v252_v32 = vmul.f32 %v244_v22, %v1757_v51  ;;  %v328_v35 = vmul.f32 %v312_v23, %v1789_v2  ;;  %v41_v24 = vld [vmem:[%s2525_s0 + $0x50] sm:$0xff]  ;;  %v1902_v27 = vld [vmem:[%s2524_s1 + $0x38] sm:$0xff]  ;;  %v44_v29 = vld [vmem:[%s2525_s0 + $0x68] sm:$0xff] }
  0xe6   :  { %v324_v38 = vmul.f32 %v312_v23, %v1787_v63  ;;  %v248_v39 = vmul.f32 %v244_v22, %v1801_v7  ;;  %v320_v44 = vmul.f32 %v312_v23, %v1814_v21  ;;  %v316_v46 = vmul.f32 %v312_v23, %v1796_v5  ;;  %v40_v22 = vld [vmem:[%s2525_s0 + $0x48] sm:$0xff] }
  0xe7   :  { %476 = vmatpush.msra.mxu3 %v342_v28  ;;  %v292_v34 = vadd.f32 %v1777_v59, %v260_v30  ;;  %v288_v37 = vadd.f32 %v1767_v55, %v256_v31  ;;  %v284_v42 = vadd.f32 %v1785_v62, %v252_v32  ;;  %v1873_v23 = vld [vmem:[%s2524_s1 + $0x28] sm:$0xff]  ;;  %v43_v28 = vld [vmem:[%s2525_s0 + $0x60] sm:$0xff]  ;;  %v45_v30 = vld [vmem:[%s2525_s0 + $0x70] sm:$0xff] }
  0xe8   :  { %v280_v45 = vadd.f32 %v1794_v4, %v248_v39  ;;  %v46_v31 = vld [vmem:[%s2525_s0 + $0x78] sm:$0xff]  ;;  %v784_v32 = vld [vmem:[%s2525_s0 + $0x280] sm:$0xff] }
  0xe9   :  { %477 = vmatpush.msra.mxu3 %v338_v33  ;;  %v344_v41 = vadd.f32 %v328_v35, %v292_v34  ;;  %v340_v43 = vadd.f32 %v324_v38, %v288_v37  ;;  %v336_v47 = vadd.f32 %v320_v44, %v284_v42  ;;  %v800_v33 = vld [vmem:[%s2525_s0 + $0x300] sm:$0xff]  ;;  %v785_v34 = vld [vmem:[%s2525_s0 + $0x288] sm:$0xff]  ;;  %v802_v37 = vld [vmem:[%s2525_s0 + $0x310] sm:$0xff] }
  0xea   :  { %v332_v48 = vadd.f32 %v316_v46, %v280_v45  ;;  %v801_v35 = vld [vmem:[%s2525_s0 + $0x308] sm:$0xff]  ;;  %v787_v38 = vld [vmem:[%s2525_s0 + $0x298] sm:$0xff]  ;;  %v788_v45 = vld [vmem:[%s2525_s0 + $0x2a0] sm:$0xff] }
  0xeb   :  { %478 = vmatpush.msra.mxu3 %v334_v40  ;;  %100 = vxpose.xlu2.b32.cont [6/16] (narrow) %v36_v36, 8  ;;  %v786_v36 = vld [vmem:[%s2525_s0 + $0x290] sm:$0xff]  ;;  %v803_v39 = vld [vmem:[%s2525_s0 + $0x318] sm:$0xff] }
  0xec   :  { %417 = vmatpush.msra.mxu1 %v344_v41  ;;  %1393 = vmatmul.msk.f32.vlgmr.msra.gmra.mxu3 %vm367_vm0, %v1859_v20 }
  0xee   :  { %418 = vmatpush.msra.mxu1 %v340_v43 }
  0xf0   :  { %419 = vmatpush.msra.mxu1 %v336_v47 }
  0xf2   :  { %420 = vmatpush.msra.mxu1 %v332_v48 }
  0xf3   :  { %101 = vxpose.xlu2.b32.cont [7/16] (narrow) %v37_v49, 8  ;;  %1385 = vmatmul.msk.f32.vlgmr.msra.gmra.mxu1 %vm367_vm0, %v1859_v20 }
  0xf4   :  { %1394 = vmatmul.msk.f32.gmra.mxu3 %vm367_vm0, %v1873_v23 }
  0xf7   :  { %v175_v50 = vpop.trf.xlu1 }
  0xf8   :  { %v245_v52 = vperm.slane %v175_v50, 0  ;;  %v313_v53 = vperm.slane %v175_v50, 1 }
  0xfa   :  { %v261_v57 = vmul.f32 %v245_v52, %v1765_v54  ;;  %v257_v60 = vmul.f32 %v245_v52, %v1775_v58  ;;  %v253_v61 = vmul.f32 %v245_v52, %v1757_v51  ;;  %v329_v6 = vmul.f32 %v313_v53, %v1789_v2 }
  0xfb   :  { %102 = vxpose.xlu2.b32.cont [8/16] (narrow) %v38_v56, 8  ;;  %v249_v9 = vmul.f32 %v245_v52, %v1801_v7  ;;  %v325_v11 = vmul.f32 %v313_v53, %v1787_v63  ;;  %v321_v15 = vmul.f32 %v313_v53, %v1814_v21  ;;  %v317_v18 = vmul.f32 %v313_v53, %v1796_v5  ;;  %v804_v53 = vld [vmem:[%s2525_s0 + $0x320] sm:$0xff] }
  0xfc   :  { %v293_v3 = vadd.f32 %v1777_v59, %v261_v57  ;;  %v289_v8 = vadd.f32 %v1767_v55, %v257_v60  ;;  %v285_v12 = vadd.f32 %v1785_v62, %v253_v61  ;;  %1386 = vmatmul.msk.f32.gmra.mxu1 %vm367_vm0, %v1873_v23  ;;  %1395 = vmatmul.msk.f32.gmra.mxu3 %vm367_vm0, %v1887_v25 }
  0xfd   :  { %v281_v16 = vadd.f32 %v1794_v4, %v249_v9 }
  0xfe   :  { %v345_v10 = vadd.f32 %v329_v6, %v293_v3  ;;  %v341_v13 = vadd.f32 %v325_v11, %v289_v8  ;;  %v337_v17 = vadd.f32 %v321_v15, %v285_v12  ;;  %v816_v8 = vld [vmem:[%s2525_s0 + $0x380] sm:$0xff]  ;;  %v805_v12 = vld [vmem:[%s2525_s0 + $0x328] sm:$0xff]  ;;  %v806_v15 = vld [vmem:[%s2525_s0 + $0x330] sm:$0xff] }
  0xff   :  { %v333_v19 = vadd.f32 %v317_v18, %v281_v16  ;;  %v818_v16 = vld [vmem:[%s2525_s0 + $0x390] sm:$0xff]  ;;  %v807_v18 = vld [vmem:[%s2525_s0 + $0x338] sm:$0xff] }
 0x100   :  { %446 = vmatpush.msra.mxu2 %v345_v10  ;;  %v789_v10 = vld [vmem:[%s2525_s0 + $0x2a8] sm:$0xff] }
 0x102   :  { %447 = vmatpush.msra.mxu2 %v341_v13  ;;  %v817_v13 = vld [vmem:[%s2525_s0 + $0x388] sm:$0xff] }
 0x103   :  { %103 = vxpose.xlu2.b32.cont [9/16] (narrow) %v39_v14, 8  ;;  %v790_v14 = vld [vmem:[%s2525_s0 + $0x2b0] sm:$0xff] }
 0x104   :  { %448 = vmatpush.msra.mxu2 %v337_v17  ;;  %1387 = vmatmul.msk.f32.gmra.mxu1 %vm367_vm0, %v1887_v25  ;;  %v791_v17 = vld [vmem:[%s2525_s0 + $0x2b8] sm:$0xff] }
 0x105   :  { %1396 = vmatmul.msk.f32.gmra.mxu3 %vm367_vm0, %v1902_v27 }
 0x106   :  { %449 = vmatpush.msra.mxu2 %v333_v19  ;;  %v819_v19 = vld [vmem:[%s2525_s0 + $0x398] sm:$0xff] }
 0x107   :  { %1389 = vmatmul.msk.f32.vlgmr.msra.gmra.mxu2 %vm367_vm0, %v1859_v20 }
 0x10b   :  { %104 = vxpose.xlu2.b32.cont [10/16] (narrow) %v40_v22, 8  ;;  %v792_v22 = vld [vmem:[%s2525_s0 + $0x2c0] sm:$0xff] }
 0x10c   :  { %1388 = vmatmul.msk.f32.gmra.mxu1 %vm367_vm0, %v1902_v27 }
 0x10f   :  { %1390 = vmatmul.msk.f32.gmra.mxu2 %vm367_vm0, %v1873_v23 }
 0x113   :  { %105 = vxpose.xlu2.b32.cont [11/16] (narrow) %v41_v24, 8  ;;  %v808_v24 = vld [vmem:[%s2525_s0 + $0x340] sm:$0xff] }
 0x117   :  { %1391 = vmatmul.msk.f32.gmra.mxu2 %vm367_vm0, %v1887_v25 }
 0x11b   :  { %106 = vxpose.xlu2.b32.cont [12/16] (narrow) %v42_v26, 8 }
 0x11d   :  { %1456 = vset.pattern.permute.xlu0 %v1590_v0 }
 0x11e   :  { %1457 = vset.pattern.permute.xlu1 %v1590_v0 }
 0x11f   :  { %1392 = vmatmul.msk.f32.gmra.mxu2 %vm367_vm0, %v1902_v27 }
 0x123   :  { %107 = vxpose.xlu2.b32.cont [13/16] (narrow) %v43_v28, 8  ;;  %v820_v28 = vld [vmem:[%s2525_s0 + $0x3a0] sm:$0xff] }
 0x124   :  { %364 = vperm.xlu0 %1456, %v1902_v27  }
 0x125   :  { %359 = vperm.xlu1 %1457, %v1887_v25  }
 0x12b   :  { %108 = vxpose.xlu2.b32.cont [14/16] (narrow) %v44_v29, 8  ;;  %v793_v29 = vld [vmem:[%s2525_s0 + $0x2c8] sm:$0xff] }
 0x12d   :  { %354 = vperm.xlu1 %1457, %v1873_v23  }
 0x133   :  { %109 = vxpose.xlu2.b32.cont [15/16] (narrow) %v45_v30, 8  ;;  %v809_v30 = vld [vmem:[%s2525_s0 + $0x348] sm:$0xff] }
 0x135   :  { %349 = vperm.xlu1 %1457, %v1859_v20  }
 0x13b   :  { %110 = vxpose.xlu2.b32.end [16/16] (narrow) %v46_v31, 8 }
 0x143   :  { %864 = vxpose.xlu2.b32.start [1/16] (narrow) %v784_v32, 8 }
 0x146   :  { %896 = vxpose.xlu0.b32.start [1/16] (narrow) %v800_v33, 8  ;;  %v821_v33 = vld [vmem:[%s2525_s0 + $0x3a8] sm:$0xff] }
 0x14b   :  { %865 = vxpose.xlu2.b32.cont [2/16] (narrow) %v785_v34, 8  ;;  %v794_v34 = vld [vmem:[%s2525_s0 + $0x2d0] sm:$0xff] }
 0x14e   :  { %897 = vxpose.xlu0.b32.cont [2/16] (narrow) %v801_v35, 8  ;;  %v810_v35 = vld [vmem:[%s2525_s0 + $0x350] sm:$0xff] }
 0x153   :  { %866 = vxpose.xlu2.b32.cont [3/16] (narrow) %v786_v36, 8 }
 0x156   :  { %898 = vxpose.xlu0.b32.cont [3/16] (narrow) %v802_v37, 8 }
 0x15b   :  { %867 = vxpose.xlu2.b32.cont [4/16] (narrow) %v787_v38, 8 }
 0x15c   :  { %v111_v40 = vpop.trf.xlu2 }
 0x15d   :  { %v243_v41 = vperm.slane %v111_v40, 0  ;;  %v311_v42 = vperm.slane %v111_v40, 1 }
 0x15e   :  { %899 = vxpose.xlu0.b32.cont [4/16] (narrow) %v803_v39, 8  ;;  %v822_v39 = vld [vmem:[%s2525_s0 + $0x3b0] sm:$0xff] }
 0x15f   :  { %v259_v43 = vmul.f32 %v243_v41, %v1765_v54  ;;  %v255_v44 = vmul.f32 %v243_v41, %v1775_v58  ;;  %v251_v46 = vmul.f32 %v243_v41, %v1757_v51  ;;  %v327_v48 = vmul.f32 %v311_v42, %v1789_v2 }
 0x160   :  { %v247_v50 = vmul.f32 %v243_v41, %v1801_v7  ;;  %v323_v56 = vmul.f32 %v311_v42, %v1787_v63  ;;  %v319_v61 = vmul.f32 %v311_v42, %v1814_v21  ;;  %v315_v9 = vmul.f32 %v311_v42, %v1796_v5  ;;  %v795_v41 = vld [vmem:[%s2525_s0 + $0x2d8] sm:$0xff] }
 0x161   :  { %v291_v47 = vadd.f32 %v1777_v59, %v259_v43  ;;  %v287_v49 = vadd.f32 %v1767_v55, %v255_v44  ;;  %v283_v57 = vadd.f32 %v1785_v62, %v251_v46  ;;  %v811_v44 = vld [vmem:[%s2525_s0 + $0x358] sm:$0xff] }
 0x162   :  { %v279_v3 = vadd.f32 %v1794_v4, %v247_v50 }
 0x163   :  { %868 = vxpose.xlu2.b32.cont [5/16] (narrow) %v788_v45, 8  ;;  %v343_v52 = vadd.f32 %v327_v48, %v291_v47  ;;  %v339_v60 = vadd.f32 %v323_v56, %v287_v49  ;;  %v335_v6 = vadd.f32 %v319_v61, %v283_v57  ;;  %v823_v49 = vld [vmem:[%s2525_s0 + $0x3b8] sm:$0xff]  ;;  %v812_v56 = vld [vmem:[%s2525_s0 + $0x360] sm:$0xff] }
 0x164   :  { %v331_v11 = vadd.f32 %v315_v9, %v279_v3 }
 0x165   :  { %388 = vmatpush.msra.mxu0 %v343_v52  ;;  %v796_v52 = vld [vmem:[%s2525_s0 + $0x2e0] sm:$0xff] }
 0x166   :  { %900 = vxpose.xlu0.b32.cont [5/16] (narrow) %v804_v53, 8 }
 0x167   :  { %389 = vmatpush.msra.mxu0 %v339_v60 }
 0x169   :  { %390 = vmatpush.msra.mxu0 %v335_v6 }
 0x16a   :  { %928 = vxpose.xlu1.b32.start [1/16] (narrow) %v816_v8, 8  ;;  %v824_v8 = vld [vmem:[%s2525_s0 + $0x3c0] sm:$0xff] }
 0x16b   :  { %869 = vxpose.xlu2.b32.cont [6/16] (narrow) %v789_v10, 8  ;;  %391 = vmatpush.msra.mxu0 %v331_v11  ;;  %v797_v11 = vld [vmem:[%s2525_s0 + $0x2e8] sm:$0xff] }
 0x16c   :  { %1381 = vmatmul.msk.f32.vlgmr.msra.gmra.mxu0 %vm367_vm0, %v1859_v20 }
 0x16e   :  { %901 = vxpose.xlu0.b32.cont [6/16] (narrow) %v805_v12, 8 }
 0x16f   :  { %v2033_v37 = vpop.f32.mrf.mxu3 }
 0x170   :  { %v422_v26 = vpop.f32.mrf.mxu1 }
 0x172   :  { %929 = vxpose.xlu1.b32.cont [2/16] (narrow) %v817_v13, 8 }
 0x173   :  { %870 = vxpose.xlu2.b32.cont [7/16] (narrow) %v790_v14, 8 }
 0x174   :  { %1382 = vmatmul.msk.f32.gmra.mxu0 %vm367_vm0, %v1873_v23 }
 0x176   :  { %902 = vxpose.xlu0.b32.cont [7/16] (narrow) %v806_v15, 8  ;;  %v813_v15 = vld [vmem:[%s2525_s0 + $0x368] sm:$0xff] }
 0x177   :  { %v483_v47 = vpop.f32.mrf.mxu3 }
 0x179   :  { %v425_v31 = vpop.f32.mrf.mxu1 }
 0x17a   :  { %930 = vxpose.xlu1.b32.cont [3/16] (narrow) %v818_v16, 8 }
 0x17b   :  { %871 = vxpose.xlu2.b32.cont [8/16] (narrow) %v791_v17, 8 }
 0x17c   :  { %1383 = vmatmul.msk.f32.gmra.mxu0 %vm367_vm0, %v1887_v25 }
 0x17e   :  { %903 = vxpose.xlu0.b32.cont [8/16] (narrow) %v807_v18, 8 }
 0x17f   :  { %v486_v3 = vpop.f32.mrf.mxu3 }
 0x181   :  { %v428_v36 = vpop.f32.mrf.mxu1 }
 0x182   :  { %931 = vxpose.xlu1.b32.cont [4/16] (narrow) %v819_v19, 8  ;;  %v825_v19 = vld [vmem:[%s2525_s0 + $0x3c8] sm:$0xff] }
 0x183   :  { %872 = vxpose.xlu2.b32.cont [9/16] (narrow) %v792_v22, 8 }
 0x184   :  { %1384 = vmatmul.msk.f32.gmra.mxu0 %vm367_vm0, %v1902_v27 }
 0x186   :  { %904 = vxpose.xlu0.b32.cont [9/16] (narrow) %v808_v24, 8 }
 0x188   :  { %v489_v17 = vpop.f32.mrf.mxu3 }
 0x189   :  { %v431_v45 = vpop.f32.mrf.mxu1 }
 0x18a   :  { %932 = vxpose.xlu1.b32.cont [5/16] (narrow) %v820_v28, 8  ;;  %v2022_v32 = vpop.f32.mrf.mxu2  ;;  %v798_v28 = vld [vmem:[%s2525_s0 + $0x2f0] sm:$0xff] }
 0x18b   :  { %873 = vxpose.xlu2.b32.cont [10/16] (narrow) %v793_v29, 8  ;;  %v2089_v29 = vld [vmem:[%s2524_s1 + $0x40] sm:$0xff] }
 0x18e   :  { %905 = vxpose.xlu0.b32.cont [10/16] (narrow) %v809_v30, 8 }
 0x192   :  { %933 = vxpose.xlu1.b32.cont [6/16] (narrow) %v821_v33, 8  ;;  %v454_v38 = vpop.f32.mrf.mxu2 }
 0x193   :  { %874 = vxpose.xlu2.b32.cont [11/16] (narrow) %v794_v34, 8  ;;  %v814_v34 = vld [vmem:[%s2525_s0 + $0x370] sm:$0xff] }
 0x196   :  { %906 = vxpose.xlu0.b32.cont [11/16] (narrow) %v810_v35, 8  ;;  %v2044_v43 = vpop.permute.xlu0 %364 }
 0x197   :  { %v2038_v40 = vpop.permute.xlu1 %359  ;;  %v432_v46 = vadd.f32 %v431_v45, %v2044_v43  ;;  %v490_v24 = vadd.f32 %v489_v17, %v2044_v43  ;;  %v815_v45 = vld [vmem:[%s2525_s0 + $0x378] sm:$0xff] }
 0x198   :  { %v429_v42 = vadd.f32 %v428_v36, %v2038_v40  ;;  %v487_v16 = vadd.f32 %v486_v3, %v2038_v40 }
 0x19a   :  { %934 = vxpose.xlu1.b32.cont [7/16] (narrow) %v822_v39, 8  ;;  %1462 = vtanh.f32 %v429_v42  ;;  %v457_v48 = vpop.f32.mrf.mxu2  ;;  %v2107_v39 = vld [vmem:[%s2524_s1 + $0x48] sm:$0xff] }
 0x19b   :  { %875 = vxpose.xlu2.b32.cont [12/16] (narrow) %v795_v41, 8  ;;  %1464 = vtanh.f32 %v432_v46  ;;  %v458_v61 = vadd.f32 %v457_v48, %v2038_v40  ;;  %v768_v46 = vld [vmem:[%s2525_s0 + $0x200] sm:$0xff] }
 0x19e   :  { %907 = vxpose.xlu0.b32.cont [12/16] (narrow) %v811_v44, 8 }
 0x19f   :  { %v2053_v50 = vpop.permute.xlu1 %354 }
 0x1a0   :  { %v426_v53 = vadd.f32 %v425_v31, %v2053_v50  ;;  %v1463_v57 = vpop.eup %1462  ;;  %v455_v13 = vadd.f32 %v454_v38, %v2053_v50  ;;  %v484_v22 = vadd.f32 %v483_v47, %v2053_v50  ;;  %v799_v38 = vld [vmem:[%s2525_s0 + $0x2f8] sm:$0xff]  ;;  %v2127_v47 = vld [vmem:[%s2524_s1 + $0x50] sm:$0xff] }
 0x1a1   :  { %v1465_v60 = vpop.eup %1464 }
 0x1a2   :  { %935 = vxpose.xlu1.b32.cont [8/16] (narrow) %v823_v49, 8  ;;  %1466 = vtanh.f32 %v426_v53  ;;  %577 = vmatpush.msrb.mxu1 %v1465_v60  ;;  %v460_v6 = vpop.f32.mrf.mxu2  ;;  %v828_v49 = vld [vmem:[%s2525_s0 + $0x3e0] sm:$0xff]  ;;  %v2144_v53 = vld [vmem:[%s2524_s1 + $0x58] sm:$0xff]  ;;  %v830_v60 = vld [vmem:[%s2525_s0 + $0x3f0] sm:$0xff] }
 0x1a3   :  { %876 = vxpose.xlu2.b32.cont [13/16] (narrow) %v796_v52, 8  ;;  %v461_v10 = vadd.f32 %v460_v6, %v2044_v43  ;;  %1468 = vtanh.f32 %v458_v61  ;;  %v769_v52 = vld [vmem:[%s2525_s0 + $0x208] sm:$0xff]  ;;  %v771_v61 = vld [vmem:[%s2525_s0 + $0x218] sm:$0xff] }
 0x1a4   :  { %578 = vmatpush.msrb.mxu1 %v1463_v57  ;;  %v770_v57 = vld [vmem:[%s2525_s0 + $0x210] sm:$0xff] }
 0x1a5   :  { %1470 = vtanh.f32 %v461_v10 }
 0x1a6   :  { %908 = vxpose.xlu0.b32.cont [13/16] (narrow) %v812_v56, 8  ;;  %v829_v56 = vld [vmem:[%s2525_s0 + $0x3e8] sm:$0xff] }
 0x1a7   :  { %v2066_v9 = vpop.permute.xlu1 %349 }
 0x1a8   :  { %v423_v12 = vadd.f32 %v422_v26, %v2066_v9  ;;  %v1467_v14 = vpop.eup %1466  ;;  %v452_v31 = vadd.f32 %v2022_v32, %v2066_v9  ;;  %v826_v32 = vld [vmem:[%s2525_s0 + $0x3d0] sm:$0xff]  ;;  %v481_v42 = vadd.f32 %v2033_v37, %v2066_v9  ;;  %v827_v37 = vld [vmem:[%s2525_s0 + $0x3d8] sm:$0xff] }
 0x1a9   :  { %579 = vmatpush.msrb.mxu1 %v1467_v14  ;;  %v1469_v18 = vpop.eup %1468 }
 0x1aa   :  { %936 = vxpose.xlu1.b32.cont [9/16] (narrow) %v824_v8, 8  ;;  %1472 = vtanh.f32 %v423_v12 }
 0x1ab   :  { %877 = vxpose.xlu2.b32.cont [14/16] (narrow) %v797_v11, 8  ;;  %1474 = vtanh.f32 %v455_v13  ;;  %v1471_v26 = vpop.eup %1470  ;;  %v831_v11 = vld [vmem:[%s2525_s0 + $0x3f8] sm:$0xff]  ;;  %v772_v13 = vld [vmem:[%s2525_s0 + $0x220] sm:$0xff] }
 0x1ac   :  { %1476 = vtanh.f32 %v487_v16  ;;  %606 = vmatpush.msrb.mxu2 %v1471_v26 }
 0x1ad   :  { %1478 = vtanh.f32 %v490_v24 }
 0x1ae   :  { %909 = vxpose.xlu0.b32.cont [14/16] (narrow) %v813_v15, 8  ;;  %1480 = vtanh.f32 %v484_v22  ;;  %607 = vmatpush.msrb.mxu2 %v1469_v18 }
 0x1af   :  { %1482 = vtanh.f32 %v452_v31 }
 0x1b0   :  { %v1473_v30 = vpop.eup %1472  ;;  %1484 = vtanh.f32 %v481_v42 }
 0x1b1   :  { %580 = vmatpush.msrb.mxu1 %v1473_v30  ;;  %v1475_v33 = vpop.eup %1474 }
 0x1b2   :  { %937 = vxpose.xlu1.b32.cont [10/16] (narrow) %v825_v19, 8  ;;  %1401 = vmatmul.msk.f32.vlgmr.msrb.gmra.mxu1 %vm367_vm0, %v2089_v29  ;;  %v1477_v35 = vpop.eup %1476 }
 0x1b3   :  { %878 = vxpose.xlu2.b32.cont [15/16] (narrow) %v798_v28, 8  ;;  %608 = vmatpush.msrb.mxu2 %v1475_v33  ;;  %v1479_v36 = vpop.eup %1478 }
 0x1b4   :  { %635 = vmatpush.msrb.mxu3 %v1479_v36  ;;  %v1481_v41 = vpop.eup %1480 }
 0x1b5   :  { %v1483_v44 = vpop.eup %1482 }
 0x1b6   :  { %910 = vxpose.xlu0.b32.cont [15/16] (narrow) %v814_v34, 8  ;;  %636 = vmatpush.msrb.mxu3 %v1477_v35  ;;  %v1485_v48 = vpop.eup %1484  ;;  %v773_v34 = vld [vmem:[%s2525_s0 + $0x228] sm:$0xff] }
 0x1b7   :  { %609 = vmatpush.msrb.mxu2 %v1483_v44 }
 0x1b8   :  { %637 = vmatpush.msrb.mxu3 %v1481_v41  ;;  %1405 = vmatmul.msk.f32.vlgmr.msrb.gmra.mxu2 %vm367_vm0, %v2089_v29 }
 0x1ba   :  { %938 = vxpose.xlu1.b32.cont [11/16] (narrow) %v826_v32, 8  ;;  %1402 = vmatmul.msk.f32.gmra.mxu1 %vm367_vm0, %v2107_v39 }
 0x1bb   :  { %879 = vxpose.xlu2.b32.end [16/16] (narrow) %v799_v38, 8  ;;  %638 = vmatpush.msrb.mxu3 %v1485_v48 }
 0x1bc   :  { %1409 = vmatmul.msk.f32.vlgmr.msrb.gmra.mxu3 %vm367_vm0, %v2089_v29 }
 0x1be   :  { %911 = vxpose.xlu0.b32.end [16/16] (narrow) %v815_v45, 8 }
 0x1c0   :  { %1406 = vmatmul.msk.f32.gmra.mxu2 %vm367_vm0, %v2107_v39 }
 0x1c2   :  { %939 = vxpose.xlu1.b32.cont [12/16] (narrow) %v827_v37, 8  ;;  %1403 = vmatmul.msk.f32.gmra.mxu1 %vm367_vm0, %v2127_v47 }
 0x1c3   :  { %832 = vxpose.xlu2.b32.start [1/16] (narrow) %v768_v46, 8 }
 0x1c4   :  { %1410 = vmatmul.msk.f32.gmra.mxu3 %vm367_vm0, %v2107_v39 }
 0x1c8   :  { %1407 = vmatmul.msk.f32.gmra.mxu2 %vm367_vm0, %v2127_v47 }
 0x1ca   :  { %940 = vxpose.xlu1.b32.cont [13/16] (narrow) %v828_v49, 8  ;;  %1404 = vmatmul.msk.f32.gmra.mxu1 %vm367_vm0, %v2144_v53 }
 0x1cb   :  { %833 = vxpose.xlu2.b32.cont [2/16] (narrow) %v769_v52, 8  ;;  %v774_v52 = vld [vmem:[%s2525_s0 + $0x230] sm:$0xff] }
 0x1cc   :  { %1411 = vmatmul.msk.f32.gmra.mxu3 %vm367_vm0, %v2127_v47 }
 0x1d0   :  { %1408 = vmatmul.msk.f32.gmra.mxu2 %vm367_vm0, %v2144_v53 }
 0x1d2   :  { %941 = vxpose.xlu1.b32.cont [14/16] (narrow) %v829_v56, 8 }
 0x1d3   :  { %834 = vxpose.xlu2.b32.cont [3/16] (narrow) %v770_v57, 8 }
 0x1d4   :  { %1412 = vmatmul.msk.f32.gmra.mxu3 %vm367_vm0, %v2144_v53 }
 0x1da   :  { %942 = vxpose.xlu1.b32.cont [15/16] (narrow) %v830_v60, 8 }
 0x1db   :  { %835 = vxpose.xlu2.b32.cont [4/16] (narrow) %v771_v61, 8 }
 0x1dc   :  { %v880_v3 = vpop.trf.xlu2 }
 0x1dd   :  { %v961_v6 = vperm.slane %v880_v3, 0  ;;  %v997_v8 = vperm.slane %v880_v3, 1 }
 0x1df   :  { %v977_v10 = vmul.f32 %v961_v6, %v1765_v54  ;;  %v973_v12 = vmul.f32 %v961_v6, %v1775_v58  ;;  %v969_v14 = vmul.f32 %v961_v6, %v1757_v51  ;;  %v1013_v16 = vmul.f32 %v997_v8, %v1789_v2 }
 0x1e0   :  { %v965_v18 = vmul.f32 %v961_v6, %v1801_v7  ;;  %v1009_v22 = vmul.f32 %v997_v8, %v1787_v63  ;;  %v1005_v28 = vmul.f32 %v997_v8, %v1814_v21  ;;  %v1001_v33 = vmul.f32 %v997_v8, %v1796_v5 }
 0x1e1   :  { %v993_v15 = vadd.f32 %v977_v10, %v1777_v59  ;;  %v989_v17 = vadd.f32 %v973_v12, %v1767_v55  ;;  %v985_v24 = vadd.f32 %v969_v14, %v1785_v62 }
 0x1e2   :  { %943 = vxpose.xlu1.b32.end [16/16] (narrow) %v831_v11, 8  ;;  %v981_v30 = vadd.f32 %v965_v18, %v1794_v4 }
 0x1e3   :  { %836 = vxpose.xlu2.b32.cont [5/16] (narrow) %v772_v13, 8  ;;  %v1029_v19 = vadd.f32 %v1013_v16, %v993_v15  ;;  %v1025_v26 = vadd.f32 %v1009_v22, %v989_v17  ;;  %v1021_v31 = vadd.f32 %v1005_v28, %v985_v24  ;;  %v775_v13 = vld [vmem:[%s2525_s0 + $0x238] sm:$0xff]  ;;  %v776_v15 = vld [vmem:[%s2525_s0 + $0x240] sm:$0xff]  ;;  %v777_v24 = vld [vmem:[%s2525_s0 + $0x248] sm:$0xff] }
 0x1e4   :  { %v1017_v36 = vadd.f32 %v1001_v33, %v981_v30 }
 0x1e5   :  { %1073 = vmatpush.msra.mxu1 %v1029_v19 }
 0x1e7   :  { %1074 = vmatpush.msra.mxu1 %v1025_v26 }
 0x1e9   :  { %v393_v35 = vpop.f32.mrf.mxu0  ;;  %1075 = vmatpush.msra.mxu1 %v1021_v31 }
 0x1ea   :  { %v912_v32 = vpop.trf.xlu0  ;;  %v394_v22 = vadd.f32 %v393_v35, %v2066_v9 }
 0x1eb   :  { %v962_v38 = vperm.slane %v912_v32, 0  ;;  %v998_v41 = vperm.slane %v912_v32, 1  ;;  %837 = vxpose.xlu2.b32.cont [6/16] (narrow) %v773_v34, 8  ;;  %1076 = vmatpush.msra.mxu1 %v1017_v36  ;;  %v778_v36 = vld [vmem:[%s2525_s0 + $0x250] sm:$0xff] }
 0x1ec   :  { %1417 = vmatmul.msk.f32.vlgmr.msra.gmra.mxu1 %vm367_vm0, %v1859_v20 }
 0x1ed   :  { %v978_v42 = vmul.f32 %v962_v38, %v1765_v54  ;;  %v974_v44 = vmul.f32 %v962_v38, %v1775_v58  ;;  %v970_v45 = vmul.f32 %v962_v38, %v1757_v51  ;;  %v1014_v46 = vmul.f32 %v998_v41, %v1789_v2 }
 0x1ee   :  { %v966_v49 = vmul.f32 %v962_v38, %v1801_v7  ;;  %v1010_v60 = vmul.f32 %v998_v41, %v1787_v63  ;;  %v1006_v6 = vmul.f32 %v998_v41, %v1814_v21  ;;  %v1002_v11 = vmul.f32 %v998_v41, %v1796_v5 }
 0x1ef   :  { %v994_v37 = vadd.f32 %v978_v42, %v1777_v59  ;;  %v990_v48 = vadd.f32 %v974_v44, %v1767_v55  ;;  %v986_v61 = vadd.f32 %v970_v45, %v1785_v62 }
 0x1f0   :  { %v982_v8 = vadd.f32 %v966_v49, %v1794_v4 }
 0x1f1   :  { %v396_v56 = vpop.f32.mrf.mxu0  ;;  %v1030_v57 = vadd.f32 %v1014_v46, %v994_v37  ;;  %v1026_v3 = vadd.f32 %v1010_v60, %v990_v48  ;;  %v1022_v10 = vadd.f32 %v1006_v6, %v986_v61  ;;  %v779_v60 = vld [vmem:[%s2525_s0 + $0x258] sm:$0xff] }
 0x1f2   :  { %v1018_v12 = vadd.f32 %v1002_v11, %v982_v8  ;;  %v397_v19 = vadd.f32 %v396_v56, %v2053_v50  ;;  %v780_v8 = vld [vmem:[%s2525_s0 + $0x260] sm:$0xff]  ;;  %v782_v11 = vld [vmem:[%s2525_s0 + $0x270] sm:$0xff] }
 0x1f3   :  { %838 = vxpose.xlu2.b32.cont [7/16] (narrow) %v774_v52, 8  ;;  %1102 = vmatpush.msra.mxu2 %v1030_v57 }
 0x1f4   :  { %1418 = vmatmul.msk.f32.gmra.mxu1 %vm367_vm0, %v1873_v23 }
 0x1f5   :  { %1103 = vmatpush.msra.mxu2 %v1026_v3 }
 0x1f7   :  { %1104 = vmatpush.msra.mxu2 %v1022_v10  ;;  %v781_v10 = vld [vmem:[%s2525_s0 + $0x268] sm:$0xff] }
 0x1f9   :  { %v399_v14 = vpop.f32.mrf.mxu0  ;;  %1105 = vmatpush.msra.mxu2 %v1018_v12  ;;  %v783_v12 = vld [vmem:[%s2525_s0 + $0x278] sm:$0xff] }
 0x1fa   :  { %1421 = vmatmul.msk.f32.vlgmr.msra.gmra.mxu2 %vm367_vm0, %v1859_v20  ;;  %v400_v17 = vadd.f32 %v399_v14, %v2038_v40 }
 0x1fb   :  { %839 = vxpose.xlu2.b32.cont [8/16] (narrow) %v775_v13, 8  ;;  %v1377_v13 = vld [vmem:[%s2524_s1 + $0x68] sm:$0xff] }
 0x1fc   :  { %1419 = vmatmul.msk.f32.gmra.mxu1 %vm367_vm0, %v1887_v25 }
 0x201   :  { %v402_v16 = vpop.f32.mrf.mxu0 }
 0x202   :  { %v403_v18 = vadd.f32 %v402_v16, %v2044_v43  ;;  %1422 = vmatmul.msk.f32.gmra.mxu2 %vm367_vm0, %v1873_v23 }
 0x203   :  { %840 = vxpose.xlu2.b32.cont [9/16] (narrow) %v776_v15, 8  ;;  %v1378_v15 = vld [vmem:[%s2524_s1 + $0x70] sm:$0xff] }
 0x204   :  { %1486 = vtanh.f32 %v403_v18  ;;  %1420 = vmatmul.msk.f32.gmra.mxu1 %vm367_vm0, %v1902_v27 }
 0x205   :  { %1488 = vtanh.f32 %v400_v17  ;;  %v1379_v17 = vld [vmem:[%s2524_s1 + $0x78] sm:$0xff] }
 0x206   :  { %1490 = vtanh.f32 %v397_v19 }
 0x207   :  { %1492 = vtanh.f32 %v394_v22 }
 0x20a   :  { %v1487_v26 = vpop.eup %1486  ;;  %1423 = vmatmul.msk.f32.gmra.mxu2 %vm367_vm0, %v1887_v25 }
 0x20b   :  { %841 = vxpose.xlu2.b32.cont [10/16] (narrow) %v777_v24, 8  ;;  %548 = vmatpush.msrb.mxu0 %v1487_v26  ;;  %v1489_v28 = vpop.eup %1488 }
 0x20c   :  { %v1491_v30 = vpop.eup %1490 }
 0x20d   :  { %549 = vmatpush.msrb.mxu0 %v1489_v28  ;;  %v1493_v35 = vpop.eup %1492 }
 0x20e   :  { %v944_v31 = vpop.trf.xlu1 }
 0x20f   :  { %v963_v33 = vperm.slane %v944_v31, 0  ;;  %v999_v34 = vperm.slane %v944_v31, 1  ;;  %550 = vmatpush.msrb.mxu0 %v1491_v30 }
 0x211   :  { %v979_v32 = vmul.f32 %v963_v33, %v1765_v54  ;;  %551 = vmatpush.msrb.mxu0 %v1493_v35  ;;  %v975_v38 = vmul.f32 %v963_v33, %v1775_v58  ;;  %v971_v41 = vmul.f32 %v963_v33, %v1757_v51  ;;  %v1015_v44 = vmul.f32 %v999_v34, %v1789_v2 }
 0x212   :  { %1424 = vmatmul.msk.f32.gmra.mxu2 %vm367_vm0, %v1902_v27  ;;  %1397 = vmatmul.msk.f32.vlgmr.msrb.gmra.mxu0 %vm367_vm0, %v2089_v29  ;;  %v967_v37 = vmul.f32 %v963_v33, %v1801_v7  ;;  %v1011_v48 = vmul.f32 %v999_v34, %v1787_v63  ;;  %v1007_v56 = vmul.f32 %v999_v34, %v1814_v21 }
 0x213   :  { %842 = vxpose.xlu2.b32.cont [11/16] (narrow) %v778_v36, 8  ;;  %v995_v42 = vadd.f32 %v979_v32, %v1777_v59  ;;  %v991_v45 = vadd.f32 %v975_v38, %v1767_v55  ;;  %v987_v49 = vadd.f32 %v971_v41, %v1785_v62  ;;  %v1003_v3 = vmul.f32 %v999_v34, %v1796_v5 }
 0x214   :  { %v983_v57 = vadd.f32 %v967_v37, %v1794_v4  ;;  %v1380_v37 = vld [vmem:[%s2524_s1 + $0x60] sm:$0x1] }
 0x215   :  { %v1031_v46 = vadd.f32 %v1015_v44, %v995_v42  ;;  %v1027_v52 = vadd.f32 %v1011_v48, %v991_v45  ;;  %v1023_v61 = vadd.f32 %v1007_v56, %v987_v49 }
 0x216   :  { %v1019_v6 = vadd.f32 %v1003_v3, %v983_v57 }
 0x217   :  { %1131 = vmatpush.msra.mxu3 %v1031_v46 }
 0x219   :  { %1132 = vmatpush.msra.mxu3 %v1027_v52 }
 0x21a   :  { %1398 = vmatmul.msk.f32.gmra.mxu0 %vm367_vm0, %v2107_v39 }
 0x21b   :  { %843 = vxpose.xlu2.b32.cont [12/16] (narrow) %v779_v60, 8  ;;  %1133 = vmatpush.msra.mxu3 %v1023_v61 }
 0x21d   :  { %1134 = vmatpush.msra.mxu3 %v1019_v6 }
 0x21e   :  { %1425 = vmatmul.msk.f32.vlgmr.msra.gmra.mxu3 %vm367_vm0, %v1859_v20 }
 0x222   :  { %1399 = vmatmul.msk.f32.gmra.mxu0 %vm367_vm0, %v2127_v47 }
 0x223   :  { %844 = vxpose.xlu2.b32.cont [13/16] (narrow) %v780_v8, 8 }
 0x226   :  { %1426 = vmatmul.msk.f32.gmra.mxu3 %vm367_vm0, %v1873_v23 }
 0x22a   :  { %1400 = vmatmul.msk.f32.gmra.mxu0 %vm367_vm0, %v2144_v53 }
 0x22b   :  { %845 = vxpose.xlu2.b32.cont [14/16] (narrow) %v781_v10, 8 }
 0x22c   :  { %510 = vperm.xlu0 %1456, %v2089_v29  }
 0x22e   :  { %1427 = vmatmul.msk.f32.gmra.mxu3 %vm367_vm0, %v1887_v25 }
 0x22f   :  { %v2288_v14 = vpop.f32.mrf.mxu1 }
 0x233   :  { %846 = vxpose.xlu2.b32.cont [15/16] (narrow) %v782_v11, 8 }
 0x234   :  { %520 = vperm.xlu0 %1456, %v2127_v47  }
 0x236   :  { %1428 = vmatmul.msk.f32.gmra.mxu3 %vm367_vm0, %v1902_v27 }
 0x237   :  { %v2295_v16 = vpop.f32.mrf.mxu1 }
 0x23b   :  { %847 = vxpose.xlu2.b32.end [16/16] (narrow) %v783_v12, 8  ;;  %v2303_v19 = vpop.f32.mrf.mxu2 }
 0x23c   :  { %515 = vperm.xlu1 %1457, %v2107_v39   ;;  %1459 = vset.pattern.permute.xlu0 %v1591_v1 }
 0x23d   :  { %675 = vperm.xlu0 %1459, %v1377_v13  }
 0x23f   :  { %v2301_v18 = vpop.f32.mrf.mxu1 }
 0x243   :  { %v2308_v30 = vpop.f32.mrf.mxu2 }
 0x244   :  { %525 = vperm.xlu1 %1457, %v2144_v53  }
 0x245   :  { %1461 = vset.pattern.permute.xlu0 %v1590_v0 }
 0x246   :  { %742 = vperm.xlu0 %1461, %v1380_v37  }
 0x247   :  { %v2306_v28 = vpop.f32.mrf.mxu1 }
 0x24b   :  { %v2321_v45 = vpop.f32.mrf.mxu2 }
 0x24c   :  { %1460 = vset.pattern.permute.xlu1 %v1591_v1 }
 0x24d   :  { %680 = vperm.xlu1 %1460, %v1378_v15  }
 0x255   :  { %685 = vperm.xlu1 %1460, %v1379_v17  }
 0x25c   :  { %v848_v22 = vpop.trf.xlu2 }
 0x25d   :  { %v960_v0 = vperm.slane %v848_v22, 0  ;;  %v996_v24 = vperm.slane %v848_v22, 1  ;;  %v1376_v22 = vld [vmem:[%s2524_s1 + $0x60] sm:$0xff] }
 0x25f   :  { %v976_v26 = vmul.f32 %v960_v0, %v1765_v54  ;;  %v972_v31 = vmul.f32 %v960_v0, %v1775_v58  ;;  %v968_v33 = vmul.f32 %v960_v0, %v1757_v51  ;;  %v1012_v35 = vmul.f32 %v996_v24, %v1789_v2 }
 0x260   :  { %v964_v32 = vmul.f32 %v960_v0, %v1801_v7  ;;  %v1008_v41 = vmul.f32 %v996_v24, %v1787_v63  ;;  %v1004_v44 = vmul.f32 %v996_v24, %v1814_v21  ;;  %v2325_v63 = vpop.f32.mrf.mxu2  ;;  %v2329_v7 = vpop.f32.mrf.mxu3 }
 0x261   :  { %v992_v34 = vadd.f32 %v976_v26, %v1777_v59  ;;  %v988_v36 = vadd.f32 %v972_v31, %v1767_v55  ;;  %v984_v54 = vadd.f32 %v968_v33, %v1785_v62  ;;  %v1000_v59 = vmul.f32 %v996_v24, %v1796_v5 }
 0x262   :  { %v980_v58 = vadd.f32 %v964_v32, %v1794_v4 }
 0x263   :  { %v1028_v38 = vadd.f32 %v1012_v35, %v992_v34  ;;  %v1024_v42 = vadd.f32 %v1008_v41, %v988_v36  ;;  %v1020_v51 = vadd.f32 %v1004_v44, %v984_v54 }
 0x264   :  { %v1016_v55 = vadd.f32 %v1000_v59, %v980_v58 }
 0x265   :  { %1044 = vmatpush.msra.mxu0 %v1028_v38 }
 0x267   :  { %1045 = vmatpush.msra.mxu0 %v1024_v42 }
 0x268   :  { %v2338_v48 = vpop.f32.mrf.mxu3 }
 0x269   :  { %1046 = vmatpush.msra.mxu0 %v1020_v51  ;;  %v1078_v2 = vpop.f32.mrf.mxu1 }
 0x26a   :  { %v1079_v49 = vadd.f32 %v1078_v2, %v2066_v9 }
 0x26b   :  { %1047 = vmatpush.msra.mxu0 %v1016_v55 }
 0x26c   :  { %1413 = vmatmul.msk.f32.vlgmr.msra.gmra.mxu0 %vm367_vm0, %v1859_v20 }
 0x270   :  { %v2344_v60 = vpop.f32.mrf.mxu3 }
 0x271   :  { %v1081_v62 = vpop.f32.mrf.mxu1 }
 0x274   :  { %1414 = vmatmul.msk.f32.gmra.mxu0 %vm367_vm0, %v1873_v23  ;;  %v1082_v23 = vadd.f32 %v1081_v62, %v2053_v50 }
 0x278   :  { %v2350_v10 = vpop.f32.mrf.mxu3 }
 0x279   :  { %v1084_v4 = vpop.f32.mrf.mxu1 }
 0x27a   :  { %v1085_v20 = vadd.f32 %v1084_v4, %v2038_v40 }
 0x27c   :  { %1415 = vmatmul.msk.f32.gmra.mxu0 %vm367_vm0, %v1887_v25 }
 0x27d   :  { %v1107_v5 = vpop.f32.mrf.mxu2 }
 0x27e   :  { %v1108_v12 = vadd.f32 %v1107_v5, %v2066_v9 }
 0x281   :  { %v1087_v21 = vpop.f32.mrf.mxu1 }
 0x282   :  { %v1088_v46 = vadd.f32 %v1087_v21, %v2044_v43 }
 0x284   :  { %1494 = vtanh.f32 %v1088_v46  ;;  %1416 = vmatmul.msk.f32.gmra.mxu0 %vm367_vm0, %v1902_v27 }
 0x285   :  { %v1110_v25 = vpop.f32.mrf.mxu2  ;;  %1496 = vtanh.f32 %v1085_v20 }
 0x286   :  { %1498 = vtanh.f32 %v1082_v23  ;;  %v1111_v11 = vadd.f32 %v1110_v25, %v2053_v50 }
 0x287   :  { %1500 = vtanh.f32 %v1079_v49 }
 0x28a   :  { %v1495_v52 = vpop.eup %1494 }
 0x28b   :  { %1205 = vmatpush.msrb.mxu1 %v1495_v52  ;;  %v1497_v56 = vpop.eup %1496 }
 0x28c   :  { %v1499_v61 = vpop.eup %1498 }
 0x28d   :  { %1206 = vmatpush.msrb.mxu1 %v1497_v56  ;;  %v1113_v57 = vpop.f32.mrf.mxu2  ;;  %v1501_v3 = vpop.eup %1500 }
 0x28e   :  { %v1114_v6 = vadd.f32 %v1113_v57, %v2038_v40 }
 0x28f   :  { %1207 = vmatpush.msrb.mxu1 %v1499_v61  ;;  %v553_v41 = vpop.f32.mrf.mxu0 }
 0x291   :  { %1208 = vmatpush.msrb.mxu1 %v1501_v3 }
 0x292   :  { %1433 = vmatmul.msk.f32.vlgmr.msrb.gmra.mxu1 %vm367_vm0, %v2089_v29 }
 0x295   :  { %v1116_v27 = vpop.f32.mrf.mxu2 }
 0x296   :  { %v1117_v8 = vadd.f32 %v1116_v27, %v2044_v43 }
 0x297   :  { %v556_v44 = vpop.f32.mrf.mxu0 }
 0x298   :  { %1502 = vtanh.f32 %v1117_v8 }
 0x299   :  { %1504 = vtanh.f32 %v1114_v6 }
 0x29a   :  { %1434 = vmatmul.msk.f32.gmra.mxu1 %vm367_vm0, %v2107_v39  ;;  %1506 = vtanh.f32 %v1111_v11 }
 0x29b   :  { %1508 = vtanh.f32 %v1108_v12 }
 0x29d   :  { %1458 = vset.pattern.permute.xlu2 %v1591_v1 }
 0x29e   :  { %v1503_v13 = vpop.eup %1502  ;;  %v2382_v51 = vpop.permute.xlu0 %510 }
 0x29f   :  { %1234 = vmatpush.msrb.mxu2 %v1503_v13  ;;  %v1505_v15 = vpop.eup %1504  ;;  %v559_v58 = vpop.f32.mrf.mxu0  ;;  %v554_v55 = vadd.f32 %v553_v41, %v2382_v51  ;;  %v583_v4 = vadd.f32 %v2288_v14, %v2382_v51  ;;  %v612_v37 = vadd.f32 %v2303_v19, %v2382_v51  ;;  %v641_v20 = vadd.f32 %v2329_v7, %v2382_v51 }
 0x2a0   :  { %v1507_v0 = vpop.eup %1506 }
 0x2a1   :  { %v1136_v17 = vpop.f32.mrf.mxu3  ;;  %1235 = vmatpush.msrb.mxu2 %v1505_v15  ;;  %v1509_v24 = vpop.eup %1508 }
 0x2a2   :  { %1435 = vmatmul.msk.f32.gmra.mxu1 %vm367_vm0, %v2127_v47  ;;  %v1137_v36 = vadd.f32 %v1136_v17, %v2066_v9 }
 0x2a3   :  { %1236 = vmatpush.msrb.mxu2 %v1507_v0 }
 0x2a4   :  { %670 = vperm.xlu2 %1458, %v1376_v22  }
 0x2a5   :  { %1237 = vmatpush.msrb.mxu2 %v1509_v24 }
 0x2a6   :  { %1437 = vmatmul.msk.f32.vlgmr.msrb.gmra.mxu2 %vm367_vm0, %v2089_v29  ;;  %v2389_v62 = vpop.permute.xlu0 %520 }
 0x2a7   :  { %v562_v2 = vpop.f32.mrf.mxu0  ;;  %v589_v46 = vadd.f32 %v2301_v18, %v2389_v62  ;;  %v618_v23 = vadd.f32 %v2321_v45, %v2389_v62  ;;  %v647_v45 = vadd.f32 %v2344_v60, %v2389_v62  ;;  %v560_v56 = vadd.f32 %v559_v58, %v2389_v62 }
 0x2a9   :  { %v1139_v1 = vpop.f32.mrf.mxu3 }
 0x2aa   :  { %1436 = vmatmul.msk.f32.gmra.mxu1 %vm367_vm0, %v2144_v53  ;;  %v1140_v35 = vadd.f32 %v1139_v1, %v2053_v50 }
 0x2ae   :  { %1438 = vmatmul.msk.f32.gmra.mxu2 %vm367_vm0, %v2107_v39  ;;  %v2384_v59 = vpop.permute.xlu1 %515 }
 0x2af   :  { %v557_v14 = vadd.f32 %v556_v44, %v2384_v59  ;;  %v586_v25 = vadd.f32 %v2295_v16, %v2384_v59  ;;  %v615_v19 = vadd.f32 %v2308_v30, %v2384_v59  ;;  %v644_v7 = vadd.f32 %v2338_v48, %v2384_v59  ;;  %v2426_v13 = vpop.permute.xlu0 %675 }
 0x2b1   :  { %v1142_v26 = vpop.f32.mrf.mxu3 }
 0x2b2   :  { %v1143_v34 = vadd.f32 %v1142_v26, %v2038_v40 }
 0x2b6   :  { %1439 = vmatmul.msk.f32.gmra.mxu2 %vm367_vm0, %v2127_v47  ;;  %v2393_v5 = vpop.permute.xlu1 %525 }
 0x2b7   :  { %v592_v30 = vadd.f32 %v2306_v28, %v2393_v5  ;;  %v563_v48 = vadd.f32 %v562_v2, %v2393_v5  ;;  %v621_v60 = vadd.f32 %v2325_v63, %v2393_v5  ;;  %v650_v6 = vadd.f32 %v2350_v10, %v2393_v5 }
 0x2b9   :  { %v1145_v31 = vpop.f32.mrf.mxu3 }
 0x2ba   :  { %v1146_v33 = vadd.f32 %v1145_v31, %v2044_v43 }
 0x2bc   :  { %1510 = vtanh.f32 %v1146_v33 }
 0x2bd   :  { %1512 = vtanh.f32 %v1143_v34 }
 0x2be   :  { %1440 = vmatmul.msk.f32.gmra.mxu2 %vm367_vm0, %v2144_v53  ;;  %1514 = vtanh.f32 %v1140_v35 }
 0x2bf   :  { %1516 = vtanh.f32 %v1137_v36  ;;  %v2417_v16 = vpop.permute.xlu1 %680 }
 0x2c0   :  { %1518 = vtanh.f32 %v554_v55 }
 0x2c1   :  { %1520 = vtanh.f32 %v583_v4 }
 0x2c2   :  { %v1511_v32 = vpop.eup %1510  ;;  %1522 = vtanh.f32 %v612_v37 }
 0x2c3   :  { %1263 = vmatpush.msrb.mxu3 %v1511_v32  ;;  %v1513_v38 = vpop.eup %1512  ;;  %1524 = vtanh.f32 %v641_v20 }
 0x2c4   :  { %v1515_v54 = vpop.eup %1514  ;;  %1526 = vtanh.f32 %v589_v46 }
 0x2c5   :  { %1264 = vmatpush.msrb.mxu3 %v1513_v38  ;;  %v1517_v42 = vpop.eup %1516  ;;  %1528 = vtanh.f32 %v618_v23 }
 0x2c6   :  { %v1519_v49 = vpop.eup %1518  ;;  %1530 = vtanh.f32 %v557_v14 }
 0x2c7   :  { %1265 = vmatpush.msrb.mxu3 %v1515_v54  ;;  %v1521_v52 = vpop.eup %1520  ;;  %1532 = vtanh.f32 %v586_v25  ;;  %v2428_v0 = vpop.permute.xlu1 %685 }
 0x2c8   :  { %v1523_v57 = vpop.eup %1522  ;;  %1534 = vtanh.f32 %v615_v19 }
 0x2c9   :  { %1266 = vmatpush.msrb.mxu3 %v1517_v42  ;;  %v1525_v61 = vpop.eup %1524  ;;  %1536 = vtanh.f32 %v644_v7 }
 0x2ca   :  { %1441 = vmatmul.msk.f32.vlgmr.msrb.gmra.mxu3 %vm367_vm0, %v2089_v29  ;;  %v1527_v3 = vpop.eup %1526  ;;  %1538 = vtanh.f32 %v647_v45 }
 0x2cb   :  { %v1529_v27 = vpop.eup %1528  ;;  %1540 = vtanh.f32 %v560_v56  ;;  %v697_v26 = vmul.f32 %v1527_v3, %v2417_v16 }
 0x2cc   :  { %v1531_v8 = vpop.eup %1530  ;;  %1542 = vtanh.f32 %v592_v30  ;;  %v698_v42 = vmul.f32 %v1529_v27, %v2417_v16 }
 0x2cd   :  { %v1533_v11 = vpop.eup %1532  ;;  %1544 = vtanh.f32 %v563_v48  ;;  %v692_v63 = vmul.f32 %v1531_v8, %v2426_v13 }
 0x2ce   :  { %v1535_v28 = vpop.eup %1534  ;;  %1546 = vtanh.f32 %v621_v60  ;;  %v693_v24 = vmul.f32 %v1533_v11, %v2426_v13 }
 0x2cf   :  { %v1537_v15 = vpop.eup %1536  ;;  %1548 = vtanh.f32 %v650_v6  ;;  %v694_v31 = vmul.f32 %v1535_v28, %v2426_v13 }
 0x2d0   :  { %v1539_v17 = vpop.eup %1538  ;;  %v695_v33 = vmul.f32 %v1537_v15, %v2426_v13 }
 0x2d1   :  { %v1541_v22 = vpop.eup %1540  ;;  %v699_v44 = vmul.f32 %v1539_v17, %v2417_v16 }
 0x2d2   :  { %1442 = vmatmul.msk.f32.gmra.mxu3 %vm367_vm0, %v2107_v39  ;;  %v1543_v10 = vpop.eup %1542  ;;  %v696_v1 = vmul.f32 %v1541_v22, %v2417_v16 }
 0x2d3   :  { %v1545_v35 = vpop.eup %1544  ;;  %v701_v2 = vmul.f32 %v1543_v10, %v2428_v0 }
 0x2d4   :  { %v1547_v54 = vpop.eup %1546  ;;  %v700_v58 = vmul.f32 %v1545_v35, %v2428_v0 }
 0x2d5   :  { %v1549_v55 = vpop.eup %1548  ;;  %v702_v14 = vmul.f32 %v1547_v54, %v2428_v0 }
 0x2d6   :  { %v703_v25 = vmul.f32 %v1549_v55, %v2428_v0 }
 0x2da   :  { %1443 = vmatmul.msk.f32.gmra.mxu3 %vm367_vm0, %v2127_v47 }
 0x2e2   :  { %1444 = vmatmul.msk.f32.gmra.mxu3 %vm367_vm0, %v2144_v53 }
 0x2e9   :  { %v2395_v21 = vpop.f32.mrf.mxu0 }
 0x2ea   :  { %v1050_v60 = vadd.f32 %v2395_v21, %v2066_v9 }
 0x2f1   :  { %v2412_v18 = vpop.f32.mrf.mxu0 }
 0x2f9   :  { %v1055_v12 = vpop.f32.mrf.mxu0 }
 0x2fa   :  { %v1056_v19 = vadd.f32 %v1055_v12, %v2038_v40 }
 0x2fe   :  { %v2436_v34 = vpop.permute.xlu2 %670 }
 0x2ff   :  { %v688_v36 = vmul.f32 %v1519_v49, %v2436_v34  ;;  %v689_v32 = vmul.f32 %v1521_v52, %v2436_v34  ;;  %v690_v38 = vmul.f32 %v1523_v57, %v2436_v34  ;;  %v691_v41 = vmul.f32 %v1525_v61, %v2436_v34 }
 0x300   :  { %v1053_v57 = vadd.f32 %v2412_v18, %v2053_v50 }
 0x301   :  { %v704_v4 = vadd.f32 %v692_v63, %v688_v36  ;;  %v713_v37 = vadd.f32 %v693_v24, %v689_v32  ;;  %v722_v20 = vadd.f32 %v694_v31, %v690_v38  ;;  %v731_v46 = vadd.f32 %v695_v33, %v691_v41  ;;  %v1058_v23 = vpop.f32.mrf.mxu0  ;;  %v2454_v32 = vpop.permute.xlu0 %742 }
 0x302   :  { %v1059_v7 = vadd.f32 %v1058_v23, %v2044_v43 }
 0x303   :  { %v705_v49 = vadd.f32 %v704_v4, %v696_v1  ;;  %v714_v45 = vadd.f32 %v713_v37, %v697_v26  ;;  %v723_v52 = vadd.f32 %v722_v20, %v698_v42  ;;  %v732_v56 = vadd.f32 %v731_v46, %v699_v44 }
 0x304   :  { %1550 = vtanh.f32 %v1059_v7  ;;  %v763_v44 = vlaneseq }
 0x305   :  { %v706_v30 = vadd.f32 %v705_v49, %v700_v58  ;;  %v715_v61 = vadd.f32 %v714_v45, %v701_v2  ;;  %v724_v48 = vadd.f32 %v723_v52, %v702_v14  ;;  %v733_v3 = vadd.f32 %v732_v56, %v703_v25 }
 0x306   :  { %1552 = vtanh.f32 %v1056_v19  ;;  %vm2462_vm4 = vcmp.lt.s32.totalorder %v763_v44, 512 }
 0x307   :  { %v707_v27 = vrot.slane %v706_v30, 4  ;;  %v716_v40 = vrot.slane %v715_v61, 4  ;;  %v725_v6 = vrot.slane %v724_v48, 4  ;;  %v734_v43 = vrot.slane %v733_v3, 4 }
 0x308   :  { %1554 = vtanh.f32 %v1053_v57 }
 0x309   :  { %v708_v8 = vadd.f32 %v707_v27, %v706_v30  ;;  %v717_v11 = vadd.f32 %v716_v40, %v715_v61  ;;  %v726_v12 = vadd.f32 %v725_v6, %v724_v48  ;;  %v735_v28 = vadd.f32 %v734_v43, %v733_v3 }
 0x30a   :  { %v1551_v15 = vpop.eup %1550  ;;  %1556 = vtanh.f32 %v1050_v60 }
 0x30b   :  { %1176 = vmatpush.msrb.mxu0 %v1551_v15  ;;  %v709_v50 = vrot.slane %v708_v8, 2  ;;  %v718_v18 = vrot.slane %v717_v11, 2  ;;  %v727_v17 = vrot.slane %v726_v12, 2  ;;  %v736_v22 = vrot.slane %v735_v28, 2 }
 0x30c   :  { %v1553_v63 = vpop.eup %1552 }
 0x30d   :  { %1177 = vmatpush.msrb.mxu0 %v1553_v63  ;;  %v710_v9 = vadd.f32 %v709_v50, %v708_v8  ;;  %v719_v21 = vadd.f32 %v718_v18, %v717_v11  ;;  %v728_v24 = vadd.f32 %v727_v17, %v726_v12  ;;  %v737_v10 = vadd.f32 %v736_v22, %v735_v28 }
 0x30e   :  { %v1555_v1 = vpop.eup %1554 }
 0x30f   :  { %1178 = vmatpush.msrb.mxu0 %v1555_v1  ;;  %v711_v26 = vrot.slane %v710_v9, 1  ;;  %v720_v31 = vrot.slane %v719_v21, 1  ;;  %v729_v33 = vrot.slane %v728_v24, 1  ;;  %v738_v35 = vrot.slane %v737_v10, 1  ;;  %v1210_v7 = vpop.f32.mrf.mxu1 }
 0x310   :  { %v1557_v36 = vpop.eup %1556  ;;  %v1211_v48 = vadd.f32 %v1210_v7, %v2382_v51 }
 0x311   :  { %1179 = vmatpush.msrb.mxu0 %v1557_v36  ;;  %v712_v38 = vadd.f32 %v711_v26, %v710_v9  ;;  %v721_v41 = vadd.f32 %v720_v31, %v719_v21  ;;  %v730_v54 = vadd.f32 %v729_v33, %v728_v24  ;;  %v739_v42 = vadd.f32 %v738_v35, %v737_v10 }
 0x312   :  { %1429 = vmatmul.msk.f32.vlgmr.msrb.gmra.mxu0 %vm367_vm0, %v2089_v29  ;;  %1558 = vtanh.f32 %v1211_v48 }
 0x313   :  { %v746_v58 = vadd.f32 %v2454_v32, %v721_v41  ;;  %v747_v2 = vadd.f32 %v2454_v32, %v730_v54  ;;  %v748_v55 = vadd.f32 %v2454_v32, %v739_v42  ;;  %v745_v4 = vadd.f32 %v2454_v32, %v712_v38 }
 0x315   :  { %v753_v37 = vrot.slane %v746_v58, 7  ;;  %v754_v20 = vrot.slane %v747_v2, 6  ;;  %v755_v46 = vrot.slane %v748_v55, 5 }
 0x317   :  { %v757_v29 = vsel %vm756_vm1, %v745_v4, %v753_v37  ;;  %v759_v14 = vsel %vm758_vm2, %v754_v20, %v755_v46  ;;  %v1213_v52 = vpop.f32.mrf.mxu1 }
 0x318   :  { %v761_v25 = vsel %vm760_vm3, %v757_v29, %v759_v14  ;;  %v1214_v3 = vadd.f32 %v1213_v52, %v2384_v59  ;;  %v1559_v28 = vpop.eup %1558 }
 0x319   :  { %767 = vst.msk [vmem:[%s2526_s2] sm:$0xf] %vm2462_vm4, %v761_v25  ;;  %v1297_v44 = vmul.f32 %v1559_v28, %v2436_v34 }
 0x31a   :  { %1430 = vmatmul.msk.f32.gmra.mxu0 %vm367_vm0, %v2107_v39  ;;  %1560 = vtanh.f32 %v1214_v3 }
 0x31f   :  { %v1216_v30 = vpop.f32.mrf.mxu1 }
 0x320   :  { %v1217_v39 = vadd.f32 %v1216_v30, %v2389_v62  ;;  %v1561_v18 = vpop.eup %1560 }
 0x321   :  { %v1301_v35 = vmul.f32 %v1561_v18, %v2426_v13 }
 0x322   :  { %1431 = vmatmul.msk.f32.gmra.mxu0 %vm367_vm0, %v2127_v47  ;;  %1562 = vtanh.f32 %v1217_v39 }
 0x323   :  { %v1321_v20 = vadd.f32 %v1301_v35, %v1297_v44 }
 0x327   :  { %v1219_v6 = vpop.f32.mrf.mxu1 }
 0x328   :  { %v1220_v15 = vadd.f32 %v1219_v6, %v2393_v5  ;;  %v1563_v22 = vpop.eup %1562 }
 0x329   :  { %v1239_v49 = vpop.f32.mrf.mxu2  ;;  %v1305_v58 = vmul.f32 %v1563_v22, %v2417_v16 }
 0x32a   :  { %1432 = vmatmul.msk.f32.gmra.mxu0 %vm367_vm0, %v2144_v53  ;;  %v1240_v47 = vadd.f32 %v1239_v49, %v2382_v51 }
 0x32b   :  { %v1322_v7 = vadd.f32 %v1321_v20, %v1305_v58 }
 0x32c   :  { %1564 = vtanh.f32 %v1240_v47 }
 0x331   :  { %v1242_v56 = vpop.f32.mrf.mxu2 }
 0x332   :  { %v1243_v53 = vadd.f32 %v1242_v56, %v2384_v59  ;;  %v1565_v63 = vpop.eup %1564 }
 0x333   :  { %v1298_v2 = vmul.f32 %v1565_v63, %v2436_v34 }
 0x334   :  { %1566 = vtanh.f32 %v1243_v53 }
 0x339   :  { %v1245_v61 = vpop.f32.mrf.mxu2 }
 0x33a   :  { %v1246_v8 = vadd.f32 %v1245_v61, %v2389_v62  ;;  %v1567_v9 = vpop.eup %1566 }
 0x33b   :  { %v1302_v38 = vmul.f32 %v1567_v9, %v2426_v13 }
 0x33d   :  { %v1330_v29 = vadd.f32 %v1302_v38, %v1298_v2 }
 0x341   :  { %v1248_v11 = vpop.f32.mrf.mxu2 }
 0x342   :  { %v1249_v17 = vadd.f32 %v1248_v11, %v2393_v5 }
 0x34d   :  { %v1268_v19 = vpop.f32.mrf.mxu3 }
 0x34e   :  { %v1269_v27 = vadd.f32 %v1268_v19, %v2382_v51 }
 0x355   :  { %v1271_v45 = vpop.f32.mrf.mxu3 }
 0x356   :  { %v1272_v60 = vadd.f32 %v1271_v45, %v2384_v59 }
 0x358   :  { %1568 = vtanh.f32 %v1272_v60 }
 0x359   :  { %1570 = vtanh.f32 %v1269_v27 }
 0x35d   :  { %v1274_v57 = vpop.f32.mrf.mxu3 }
 0x35e   :  { %v1275_v43 = vadd.f32 %v1274_v57, %v2389_v62  ;;  %v1569_v21 = vpop.eup %1568 }
 0x35f   :  { %v1571_v24 = vpop.eup %1570  ;;  %v1303_v26 = vmul.f32 %v1569_v21, %v2426_v13 }
 0x360   :  { %1572 = vtanh.f32 %v1275_v43  ;;  %v1299_v41 = vmul.f32 %v1571_v24, %v2436_v34 }
 0x361   :  { %1574 = vtanh.f32 %v1246_v8 }
 0x362   :  { %v1339_v4 = vadd.f32 %v1303_v26, %v1299_v41 }
 0x365   :  { %v1277_v40 = vpop.f32.mrf.mxu3 }
 0x366   :  { %v1278_v12 = vadd.f32 %v1277_v40, %v2393_v5  ;;  %v1573_v10 = vpop.eup %1572 }
 0x367   :  { %v1575_v1 = vpop.eup %1574  ;;  %v1307_v54 = vmul.f32 %v1573_v10, %v2417_v16 }
 0x368   :  { %1576 = vtanh.f32 %v1278_v12  ;;  %v1306_v55 = vmul.f32 %v1575_v1, %v2417_v16 }
 0x369   :  { %1578 = vtanh.f32 %v1220_v15  ;;  %v1340_v25 = vadd.f32 %v1339_v4, %v1307_v54 }
 0x36a   :  { %1580 = vtanh.f32 %v1249_v17  ;;  %v1331_v49 = vadd.f32 %v1330_v29, %v1306_v55 }
 0x36e   :  { %v1577_v33 = vpop.eup %1576 }
 0x36f   :  { %v1579_v36 = vpop.eup %1578  ;;  %v1311_v37 = vmul.f32 %v1577_v33, %v2428_v0 }
 0x370   :  { %v1581_v42 = vpop.eup %1580  ;;  %v1309_v46 = vmul.f32 %v1579_v36, %v2428_v0 }
 0x371   :  { %v1310_v14 = vmul.f32 %v1581_v42, %v2428_v0  ;;  %v1341_v45 = vadd.f32 %v1340_v25, %v1311_v37 }
 0x372   :  { %v1323_v30 = vadd.f32 %v1322_v7, %v1309_v46 }
 0x373   :  { %v1332_v61 = vadd.f32 %v1331_v49, %v1310_v14  ;;  %v1342_v48 = vrot.slane %v1341_v45, 4 }
 0x374   :  { %v1324_v3 = vrot.slane %v1323_v30, 4 }
 0x375   :  { %v1333_v39 = vrot.slane %v1332_v61, 4  ;;  %v1343_v47 = vadd.f32 %v1342_v48, %v1341_v45 }
 0x376   :  { %v1325_v40 = vadd.f32 %v1324_v3, %v1323_v30 }
 0x377   :  { %v1334_v6 = vadd.f32 %v1333_v39, %v1332_v61  ;;  %v1344_v43 = vrot.slane %v1343_v47, 2 }
 0x378   :  { %v1326_v8 = vrot.slane %v1325_v40, 2 }
 0x379   :  { %v1335_v11 = vrot.slane %v1334_v6, 2  ;;  %v1345_v15 = vadd.f32 %v1344_v43, %v1343_v47 }
 0x37a   :  { %v1327_v17 = vadd.f32 %v1326_v8, %v1325_v40 }
 0x37b   :  { %v1336_v22 = vadd.f32 %v1335_v11, %v1334_v6  ;;  %v1346_v9 = vrot.slane %v1345_v15, 1 }
 0x37c   :  { %v1328_v24 = vrot.slane %v1327_v17, 1 }
 0x37d   :  { %v1337_v10 = vrot.slane %v1336_v22, 1 }
 0x37f   :  { %v1338_v33 = vadd.f32 %v1337_v10, %v1336_v22 }
 0x381   :  { %v1350_v38 = vadd.f32 %v1338_v33, %v2454_v32 }
 0x383   :  { %v1357_v44 = vrot.slane %v1350_v38, 6 }
 0x38f   :  { %v1181_v50 = vpop.f32.mrf.mxu0 }
 0x390   :  { %v1182_v52 = vadd.f32 %v1181_v50, %v2382_v51 }
 0x397   :  { %v1184_v31 = vpop.f32.mrf.mxu0 }
 0x398   :  { %v1185_v19 = vadd.f32 %v1184_v31, %v2384_v59  ;;  %v1329_v31 = vadd.f32 %v1328_v24, %v1327_v17 }
 0x39a   :  { %1582 = vtanh.f32 %v1185_v19  ;;  %v1349_v36 = vadd.f32 %v1329_v31, %v2454_v32 }
 0x39b   :  { %1584 = vtanh.f32 %v1182_v52 }
 0x39c   :  { %v1356_v42 = vrot.slane %v1349_v36, 7 }
 0x39f   :  { %v1187_v56 = vpop.f32.mrf.mxu0 }
 0x3a0   :  { %v1188_v57 = vadd.f32 %v1187_v56, %v2389_v62  ;;  %v1583_v60 = vpop.eup %1582 }
 0x3a1   :  { %v1585_v27 = vpop.eup %1584  ;;  %v1300_v62 = vmul.f32 %v1583_v60, %v2426_v13  ;;  %v1347_v13 = vadd.f32 %v1346_v9, %v1345_v15 }
 0x3a2   :  { %1586 = vtanh.f32 %v1188_v57  ;;  %v1296_v12 = vmul.f32 %v1585_v27, %v2436_v34 }
 0x3a4   :  { %v1312_v50 = vadd.f32 %v1300_v62, %v1296_v12 }
 0x3a7   :  { %v1190_v53 = vpop.f32.mrf.mxu0 }
 0x3a8   :  { %v1191_v59 = vadd.f32 %v1190_v53, %v2393_v5  ;;  %v1587_v51 = vpop.eup %1586 }
 0x3a9   :  { %v1304_v28 = vmul.f32 %v1587_v51, %v2417_v16  ;;  %v1351_v16 = vadd.f32 %v1347_v13, %v2454_v32 }
 0x3aa   :  { %1588 = vtanh.f32 %v1191_v59 }
 0x3ab   :  { %v1313_v5 = vadd.f32 %v1312_v50, %v1304_v28  ;;  %v1358_v54 = vrot.slane %v1351_v16, 5 }
 0x3ad   :  { %v1360_v2 = vsel %vm758_vm2, %v1357_v44, %v1358_v54 }
 0x3b0   :  { %v1589_v18 = vpop.eup %1588 }
 0x3b1   :  { %v1308_v63 = vmul.f32 %v1589_v18, %v2428_v0 }
 0x3b3   :  { %v1314_v21 = vadd.f32 %v1313_v5, %v1308_v63 }
 0x3b5   :  { %v1315_v1 = vrot.slane %v1314_v21, 4 }
 0x3b7   :  { %v1316_v26 = vadd.f32 %v1315_v1, %v1314_v21 }
 0x3b9   :  { %v1317_v34 = vrot.slane %v1316_v26, 2 }
 0x3bb   :  { %v1318_v35 = vadd.f32 %v1317_v34, %v1316_v26 }
 0x3bd   :  { %v1319_v41 = vrot.slane %v1318_v35, 1 }
 0x3bf   :  { %v1320_v0 = vadd.f32 %v1319_v41, %v1318_v35 }
 0x3c1   :  { %v1348_v58 = vadd.f32 %v1320_v0, %v2454_v32 }
 0x3c3   :  { %v1359_v55 = vsel %vm756_vm1, %v1348_v58, %v1356_v42 }
 0x3c4   :  { %v1361_v4 = vsel %vm760_vm3, %v1359_v55, %v1360_v2 }
 0x3c5   :  { %1363 = vst.msk [vmem:[%s2526_s2 + $0x4] sm:$0xf] %vm2462_vm4, %v1361_v4 }

</bundles_post_ra>
